<compile_context>
chip_gen: v6e
topology: v6e:2x2x1
jax: 0.10.0
libtpu: 0.0.40
codegen_flags: <defaults>
</compile_context>

<pallas_src>
import functools
import math

import jax
import jax.numpy as jnp
from jax.experimental import pallas as pl
from jax.experimental.pallas import tpu as pltpu


# ----------------------------- model config -----------------------------
VOCAB = 100
MAX_POS = 64
HIDDEN = 32
N_HEADS = 4
HEAD_DIM = HIDDEN // N_HEADS
FFN = 64
N_LAYERS = 2
FINAL_SIZE = 16
LN_EPS = 1e-12
ATTN_SCALE = 1.0 / math.sqrt(HEAD_DIM)
MASK_NEG = -1e9
MXU_DTYPE = jnp.bfloat16          # matmul weight / input dtype (f32 accumulate)

# --- packed weight layout: lane offsets inside wA's last dim (per layer) ---
OFF_WQKV = 0                      # width 3*HIDDEN = 96
OFF_WO = 128                      # width HIDDEN = 32
OFF_W1 = 256                      # width FFN = 64
OFF_POOLW = 320                   # width FINAL_SIZE = 16 (stored in layer-0 slot)
WA_LANES = 384

# --- packed vector layout: rows of `vecs` (128 lanes each) ---
ROW_EMB_LN_G = 0
ROW_EMB_LN_B = 1
ROW_POOL_B = 2
ROW_LAYER_BASE = 3
(R_BQKV, R_BO, R_SA_G, R_SA_B, R_B1, R_B2, R_OUT_G, R_OUT_B) = range(8)
ROWS_PER_LAYER = 8
VEC_ROWS = 24                     # 3 + N_LAYERS*8 = 19, padded to sublane multiple
VEC_LANES = 128


# ----------------------------- fused kernel -----------------------------

def _layer_norm(x, g, b):
    mu = jnp.mean(x, axis=-1, keepdims=True)
    var = jnp.mean((x - mu) ** 2, axis=-1, keepdims=True)
    return (x - mu) * jax.lax.rsqrt(var + LN_EPS) * g + b


def bert_kernel(emb_ref, bias_ref, wa_ref, w2_ref, vec_ref, out_ref, *, batch, seq):
    BS = batch * seq

    def vec(row, width):
        return vec_ref[row:row + 1, 0:width]                 # (1, width) f32

    # Embedding LayerNorm (token/pos gather happens in the JAX wrapper).
    x = _layer_norm(emb_ref[...],
                    vec(ROW_EMB_LN_G, HIDDEN), vec(ROW_EMB_LN_B, HIDDEN))  # (BS, H)

    bias = bias_ref[...]                                     # (NH*BS, NH*BS) additive

    for li in range(N_LAYERS):
        base = ROW_LAYER_BASE + li * ROWS_PER_LAYER
        x_bf = x.astype(MXU_DTYPE)                           # hoisted bf16 cast

        # ---- self-attention: fused QKV projection, stacked-head softmax ----
        wqkv = wa_ref[li, :, OFF_WQKV:OFF_WQKV + 3 * HIDDEN]            # (H, 3H) bf16
        qkv = jnp.dot(x_bf, wqkv, preferred_element_type=jnp.float32)
        qkv = qkv + vec(base + R_BQKV, 3 * HIDDEN)                      # (BS, 3H) f32

        # Stack heads along rows: (N_HEADS*BS, HEAD_DIM), row order (head, batch, seq).
        q_s = jnp.concatenate(
            [qkv[:, h * HEAD_DIM:(h + 1) * HEAD_DIM] for h in range(N_HEADS)], axis=0)
        k_s = jnp.concatenate(
            [qkv[:, HIDDEN + h * HEAD_DIM:HIDDEN + (h + 1) * HEAD_DIM]
             for h in range(N_HEADS)], axis=0)
        v_s = jnp.concatenate(
            [qkv[:, 2 * HIDDEN + h * HEAD_DIM:2 * HIDDEN + (h + 1) * HEAD_DIM]
             for h in range(N_HEADS)], axis=0)

        # ONE QK^T matmul (ATTN_SCALE already folded into the Q weights), ONE
        # softmax with block-diagonal bias, ONE PV matmul for all heads+batches.
        s = jax.lax.dot_general(q_s, k_s, (((1,), (1,)), ((), ())),
                                preferred_element_type=jnp.float32) + bias
        m = jnp.max(s, axis=-1, keepdims=True)
        p = jnp.exp(s - m)
        p = p / jnp.sum(p, axis=-1, keepdims=True)
        ctx_s = jnp.dot(p, v_s, preferred_element_type=jnp.float32)    # (NH*BS, D)

        # Un-stack heads back onto lanes: (BS, H).
        ctx = jnp.concatenate(
            [ctx_s[h * BS:(h + 1) * BS, :] for h in range(N_HEADS)], axis=-1)

        wo = wa_ref[li, :, OFF_WO:OFF_WO + HIDDEN]                      # (H, H) bf16
        attn = (jnp.dot(ctx.astype(MXU_DTYPE), wo,
                        preferred_element_type=jnp.float32)
                + vec(base + R_BO, HIDDEN))
        x = _layer_norm(x + attn,
                        vec(base + R_SA_G, HIDDEN), vec(base + R_SA_B, HIDDEN))

        # ---- feed-forward ----
        x_bf = x.astype(MXU_DTYPE)
        w1 = wa_ref[li, :, OFF_W1:OFF_W1 + FFN]                         # (H, F) bf16
        h1 = (jnp.dot(x_bf, w1, preferred_element_type=jnp.float32)
              + vec(base + R_B1, FFN))
        # TODO(synk): PyTorch nn.GELU defaults to the exact erf form; the tanh
        # approximation is used here for a guaranteed Mosaic lowering.
        h1 = jax.nn.gelu(h1, approximate=True)
        ffn = (jnp.dot(h1.astype(MXU_DTYPE), w2_ref[li],
                       preferred_element_type=jnp.float32)
               + vec(base + R_B2, HIDDEN))
        x = _layer_norm(x + ffn,
                        vec(base + R_OUT_G, HIDDEN), vec(base + R_OUT_B, HIDDEN))

    # ---- pooler: per-sequence mean -> Linear -> tanh ----
    # TODO(synk): mean pooling ignores the attention mask (matches the reference
    # behaviour being reproduced; a masked mean would differ).
    pooled = jnp.concatenate(
        [jnp.mean(x[b * seq:(b + 1) * seq, :], axis=0, keepdims=True)
         for b in range(batch)], axis=0)                                # (B, H)
    pool_w = wa_ref[0, :, OFF_POOLW:OFF_POOLW + FINAL_SIZE]             # (H, Fo) bf16
    res = (jnp.dot(pooled.astype(MXU_DTYPE), pool_w,
                   preferred_element_type=jnp.float32)
           + vec(ROW_POOL_B, FINAL_SIZE))
    out_ref[...] = jnp.tanh(res)


# ----------------------------- parameters -----------------------------

def init_params(key):
    ks = jax.random.split(key, 3 + N_LAYERS)

    def w(k, shape):
        return 0.02 * jax.random.normal(k, shape, jnp.float32)

    word_emb = w(ks[0], (VOCAB, HIDDEN))
    pos_emb = w(ks[1], (MAX_POS, HIDDEN))

    wA = jnp.zeros((N_LAYERS, HIDDEN, WA_LANES), jnp.float32)
    w2 = jnp.zeros((N_LAYERS, FFN, HIDDEN), jnp.float32)
    vecs = jnp.zeros((VEC_ROWS, VEC_LANES), jnp.float32)

    vecs = vecs.at[ROW_EMB_LN_G, :HIDDEN].set(1.0)        # embedding LN gamma
    # embedding LN beta, pooler bias and all layer biases stay zero.

    for li in range(N_LAYERS):
        kq, kk, kv, ko, k1, k2 = jax.random.split(ks[2 + li], 6)
        # ATTN_SCALE folded into the Q projection (weights AND — if it were
        # nonzero — the Q bias); removes a per-layer (S,S) multiply.
        wq = w(kq, (HIDDEN, HIDDEN)) * ATTN_SCALE
        wk = w(kk, (HIDDEN, HIDDEN))
        wv = w(kv, (HIDDEN, HIDDEN))
        wA = wA.at[li, :, OFF_WQKV:OFF_WQKV + 3 * HIDDEN].set(
            jnp.concatenate([wq, wk, wv], axis=-1))
        wA = wA.at[li, :, OFF_WO:OFF_WO + HIDDEN].set(w(ko, (HIDDEN, HIDDEN)))
        wA = wA.at[li, :, OFF_W1:OFF_W1 + FFN].set(w(k1, (HIDDEN, FFN)))
        w2 = w2.at[li].set(w(k2, (FFN, HIDDEN)))

        base = ROW_LAYER_BASE + li * ROWS_PER_LAYER
        vecs = vecs.at[base + R_SA_G, :HIDDEN].set(1.0)   # post-attn LN gamma
        vecs = vecs.at[base + R_OUT_G, :HIDDEN].set(1.0)  # post-FFN LN gamma

    pool_w = w(ks[2 + N_LAYERS], (HIDDEN, FINAL_SIZE))
    wA = wA.at[0, :, OFF_POOLW:OFF_POOLW + FINAL_SIZE].set(pool_w)

    return {
        "word_emb": word_emb,
        "pos_emb": pos_emb,
        "wA": wA.astype(MXU_DTYPE),
        "w2": w2.astype(MXU_DTYPE),
        "vecs": vecs,
    }


# ----------------------------- forward pass -----------------------------

def single_bert_forward(params, a, a_mask):
    """a: (B, S) int32 token ids; a_mask: (B, S) float {0,1} attention mask."""
    B, S = a.shape

    # JAX glue: embedding gather + position add (tiny vocab gather has no clean
    # Pallas equivalent at this scale).
    emb = params["word_emb"][a] + params["pos_emb"][jnp.arange(S)][None, :, :]
    emb = emb.reshape(B * S, HIDDEN).astype(jnp.float32)

    # Stacked-head additive attention bias, rows/cols ordered (head, batch, seq):
    # 0 where query & key share the same (head, batch) block and the key is not
    # padded, MASK_NEG elsewhere.
    key_ok = a_mask.astype(jnp.float32)                                  # (B, S)
    allow = (jnp.eye(N_HEADS, dtype=jnp.float32)[:, None, None, :, None, None]
             * jnp.eye(B, dtype=jnp.float32)[None, :, None, None, :, None]
             * key_ok[None, None, None, None, :, :])
    allow = jnp.broadcast_to(allow, (N_HEADS, B, S, N_HEADS, B, S))
    bias = ((1.0 - allow) * MASK_NEG).reshape(N_HEADS * B * S, N_HEADS * B * S)

    vmem = pl.BlockSpec(memory_space=pltpu.MemorySpace.VMEM)
    kernel = functools.partial(bert_kernel, batch=B, seq=S)
    out = pl.pallas_call(
        kernel,
        out_shape=jax.ShapeDtypeStruct((B, FINAL_SIZE), jnp.float32),
        in_specs=[vmem] * 5,
        out_specs=vmem,
    )(emb, bias, params["wA"], params["w2"], params["vecs"])
    return out


# ----------------------------------- main -----------------------------------

if __name__ == "__main__":
    key = jax.random.PRNGKey(0)
    pkey, ikey = jax.random.split(key)

    params = init_params(pkey)

    B, S = 2, 8
    a = jax.random.randint(ikey, (B, S), 0, VOCAB, dtype=jnp.int32)
    a_mask = jnp.array([[1, 1, 1, 1, 1, 1, 1, 1],
                        [1, 1, 1, 1, 1, 1, 0, 0]], dtype=jnp.float32)

    out = single_bert_forward(params, a, a_mask)
    out = jax.block_until_ready(out)
    assert out.shape == (B, FINAL_SIZE)
    assert bool(jnp.all(jnp.isfinite(out)))
    print("KERNEL_OK")
</pallas_src>

<mosaic_0001>
module attributes {stable_mosaic.version = 11 : i64} {
  func.func @bert_kernel(%arg0: memref<16x32xf32, #tpu.memory_space<vmem>>, %arg1: memref<64x64xf32, #tpu.memory_space<vmem>>, %arg2: memref<2x32x384xbf16, #tpu.memory_space<vmem>>, %arg3: memref<2x64x32xbf16, #tpu.memory_space<vmem>>, %arg4: memref<24x128xf32, #tpu.memory_space<vmem>>, %arg5: memref<2x16xf32, #tpu.memory_space<vmem>>) attributes {dimension_semantics = [], scalar_prefetch = 0 : i64, scratch_operands = 0 : i64, tpu.core_type = #tpu.core_type<tc>} {
    %c0 = arith.constant 0 : index
    %c0_0 = arith.constant 0 : index
    %0 = vector.load %arg0[%c0, %c0_0] : memref<16x32xf32, #tpu.memory_space<vmem>>, vector<16x32xf32>
    %c0_1 = arith.constant 0 : index
    %c0_2 = arith.constant 0 : index
    %1 = vector.load %arg4[%c0_1, %c0_2] : memref<24x128xf32, #tpu.memory_space<vmem>>, vector<1x32xf32>
    %c1 = arith.constant 1 : index
    %c0_3 = arith.constant 0 : index
    %2 = vector.load %arg4[%c1, %c0_3] : memref<24x128xf32, #tpu.memory_space<vmem>>, vector<1x32xf32>
    %cst = arith.constant dense<0.000000e+00> : vector<16xf32>
    %3 = vector.multi_reduction <add>, %0, %cst [1] : vector<16x32xf32> to vector<16xf32>
    %4 = vector.shape_cast %3 : vector<16xf32> to vector<16x1xf32>
    %cst_4 = arith.constant 3.200000e+01 : f32
    %5 = vector.broadcast %cst_4 : f32 to vector<16x1xf32>
    %6 = arith.divf %4, %5 : vector<16x1xf32>
    %7 = vector.broadcast %6 : vector<16x1xf32> to vector<16x32xf32>
    %8 = arith.subf %0, %7 : vector<16x32xf32>
    %9 = arith.mulf %8, %8 : vector<16x32xf32>
    %cst_5 = arith.constant dense<0.000000e+00> : vector<16xf32>
    %10 = vector.multi_reduction <add>, %9, %cst_5 [1] : vector<16x32xf32> to vector<16xf32>
    %11 = vector.shape_cast %10 : vector<16xf32> to vector<16x1xf32>
    %cst_6 = arith.constant 3.200000e+01 : f32
    %12 = vector.broadcast %cst_6 : f32 to vector<16x1xf32>
    %13 = arith.divf %11, %12 : vector<16x1xf32>
    %14 = vector.broadcast %6 : vector<16x1xf32> to vector<16x32xf32>
    %15 = arith.subf %0, %14 : vector<16x32xf32>
    %cst_7 = arith.constant 9.99999996E-13 : f32
    %16 = vector.broadcast %cst_7 : f32 to vector<16x1xf32>
    %17 = arith.addf %13, %16 : vector<16x1xf32>
    %18 = math.rsqrt %17 : vector<16x1xf32>
    %19 = vector.broadcast %18 : vector<16x1xf32> to vector<16x32xf32>
    %20 = arith.mulf %15, %19 : vector<16x32xf32>
    %21 = vector.broadcast %1 : vector<1x32xf32> to vector<16x32xf32>
    %22 = arith.mulf %20, %21 : vector<16x32xf32>
    %23 = vector.broadcast %2 : vector<1x32xf32> to vector<16x32xf32>
    %24 = arith.addf %22, %23 : vector<16x32xf32>
    %c0_8 = arith.constant 0 : index
    %c0_9 = arith.constant 0 : index
    %25 = vector.load %arg1[%c0_8, %c0_9] : memref<64x64xf32, #tpu.memory_space<vmem>>, vector<64x64xf32>
    %26 = arith.truncf %24 : vector<16x32xf32> to vector<16x32xbf16>
    %c0_10 = arith.constant 0 : index
    %c0_11 = arith.constant 0 : index
    %c0_12 = arith.constant 0 : index
    %27 = vector.load %arg2[%c0_10, %c0_11, %c0_12] : memref<2x32x384xbf16, #tpu.memory_space<vmem>>, vector<1x32x96xbf16>
    %28 = vector.shape_cast %27 : vector<1x32x96xbf16> to vector<32x96xbf16>
    %cst_13 = arith.constant dense<0.000000e+00> : vector<16x96xf32>
    %29 = tpu.matmul %26, %28, %cst_13 {dimension_numbers = #tpu.dot_dimension_numbers<[1], [0], [0], [1], [0, 0, 1, 1], [], []>} : vector<16x32xbf16>, vector<32x96xbf16>, vector<16x96xf32> -> vector<16x96xf32>
    %c3 = arith.constant 3 : index
    %c0_14 = arith.constant 0 : index
    %30 = vector.load %arg4[%c3, %c0_14] : memref<24x128xf32, #tpu.memory_space<vmem>>, vector<1x96xf32>
    %31 = vector.broadcast %30 : vector<1x96xf32> to vector<16x96xf32>
    %32 = arith.addf %29, %31 : vector<16x96xf32>
    %33 = vector.extract_strided_slice %32 {offsets = [0, 0], sizes = [16, 8], strides = [1, 1]} : vector<16x96xf32> to vector<16x8xf32>
    %34 = vector.extract_strided_slice %32 {offsets = [0, 8], sizes = [16, 8], strides = [1, 1]} : vector<16x96xf32> to vector<16x8xf32>
    %35 = vector.extract_strided_slice %32 {offsets = [0, 16], sizes = [16, 8], strides = [1, 1]} : vector<16x96xf32> to vector<16x8xf32>
    %36 = vector.extract_strided_slice %32 {offsets = [0, 24], sizes = [16, 8], strides = [1, 1]} : vector<16x96xf32> to vector<16x8xf32>
    %37 = tpu.concatenate %33, %34, %35, %36 in 0 : vector<16x8xf32>, vector<16x8xf32>, vector<16x8xf32>, vector<16x8xf32> -> vector<64x8xf32>
    %38 = vector.extract_strided_slice %32 {offsets = [0, 32], sizes = [16, 8], strides = [1, 1]} : vector<16x96xf32> to vector<16x8xf32>
    %39 = vector.extract_strided_slice %32 {offsets = [0, 40], sizes = [16, 8], strides = [1, 1]} : vector<16x96xf32> to vector<16x8xf32>
    %40 = vector.extract_strided_slice %32 {offsets = [0, 48], sizes = [16, 8], strides = [1, 1]} : vector<16x96xf32> to vector<16x8xf32>
    %41 = vector.extract_strided_slice %32 {offsets = [0, 56], sizes = [16, 8], strides = [1, 1]} : vector<16x96xf32> to vector<16x8xf32>
    %42 = tpu.concatenate %38, %39, %40, %41 in 0 : vector<16x8xf32>, vector<16x8xf32>, vector<16x8xf32>, vector<16x8xf32> -> vector<64x8xf32>
    %43 = vector.extract_strided_slice %32 {offsets = [0, 64], sizes = [16, 8], strides = [1, 1]} : vector<16x96xf32> to vector<16x8xf32>
    %44 = vector.extract_strided_slice %32 {offsets = [0, 72], sizes = [16, 8], strides = [1, 1]} : vector<16x96xf32> to vector<16x8xf32>
    %45 = vector.extract_strided_slice %32 {offsets = [0, 80], sizes = [16, 8], strides = [1, 1]} : vector<16x96xf32> to vector<16x8xf32>
    %46 = vector.extract_strided_slice %32 {offsets = [0, 88], sizes = [16, 8], strides = [1, 1]} : vector<16x96xf32> to vector<16x8xf32>
    %47 = tpu.concatenate %43, %44, %45, %46 in 0 : vector<16x8xf32>, vector<16x8xf32>, vector<16x8xf32>, vector<16x8xf32> -> vector<64x8xf32>
    %cst_15 = arith.constant dense<0.000000e+00> : vector<64x64xf32>
    %48 = tpu.matmul %37, %42, %cst_15 {dimension_numbers = #tpu.dot_dimension_numbers<[1], [1], [0], [0], [0, 0, 1, 0], [], []>} : vector<64x8xf32>, vector<64x8xf32>, vector<64x64xf32> -> vector<64x64xf32>
    %49 = arith.addf %48, %25 : vector<64x64xf32>
    %cst_16 = arith.constant dense<0xFF800000> : vector<64xf32>
    %50 = vector.multi_reduction <maximumf>, %49, %cst_16 [1] : vector<64x64xf32> to vector<64xf32>
    %51 = vector.shape_cast %50 : vector<64xf32> to vector<64x1xf32>
    %52 = vector.broadcast %51 : vector<64x1xf32> to vector<64x64xf32>
    %53 = arith.subf %49, %52 : vector<64x64xf32>
    %54 = math.exp %53 : vector<64x64xf32>
    %cst_17 = arith.constant dense<0.000000e+00> : vector<64xf32>
    %55 = vector.multi_reduction <add>, %54, %cst_17 [1] : vector<64x64xf32> to vector<64xf32>
    %56 = vector.shape_cast %55 : vector<64xf32> to vector<64x1xf32>
    %57 = vector.broadcast %56 : vector<64x1xf32> to vector<64x64xf32>
    %58 = arith.divf %54, %57 : vector<64x64xf32>
    %cst_18 = arith.constant dense<0.000000e+00> : vector<64x8xf32>
    %59 = tpu.matmul %58, %47, %cst_18 {dimension_numbers = #tpu.dot_dimension_numbers<[1], [0], [0], [1], [0, 0, 1, 1], [], []>} : vector<64x64xf32>, vector<64x8xf32>, vector<64x8xf32> -> vector<64x8xf32>
    %60 = vector.extract_strided_slice %59 {offsets = [0, 0], sizes = [16, 8], strides = [1, 1]} : vector<64x8xf32> to vector<16x8xf32>
    %61 = vector.extract_strided_slice %59 {offsets = [16, 0], sizes = [16, 8], strides = [1, 1]} : vector<64x8xf32> to vector<16x8xf32>
    %62 = vector.extract_strided_slice %59 {offsets = [32, 0], sizes = [16, 8], strides = [1, 1]} : vector<64x8xf32> to vector<16x8xf32>
    %63 = vector.extract_strided_slice %59 {offsets = [48, 0], sizes = [16, 8], strides = [1, 1]} : vector<64x8xf32> to vector<16x8xf32>
    %64 = tpu.concatenate %60, %61, %62, %63 in 1 : vector<16x8xf32>, vector<16x8xf32>, vector<16x8xf32>, vector<16x8xf32> -> vector<16x32xf32>
    %c0_19 = arith.constant 0 : index
    %c0_20 = arith.constant 0 : index
    %c128 = arith.constant 128 : index
    %65 = vector.load %arg2[%c0_19, %c0_20, %c128] : memref<2x32x384xbf16, #tpu.memory_space<vmem>>, vector<1x32x32xbf16>
    %66 = vector.shape_cast %65 : vector<1x32x32xbf16> to vector<32x32xbf16>
    %67 = arith.truncf %64 : vector<16x32xf32> to vector<16x32xbf16>
    %cst_21 = arith.constant dense<0.000000e+00> : vector<16x32xf32>
    %68 = tpu.matmul %67, %66, %cst_21 {dimension_numbers = #tpu.dot_dimension_numbers<[1], [0], [0], [1], [0, 0, 1, 1], [], []>} : vector<16x32xbf16>, vector<32x32xbf16>, vector<16x32xf32> -> vector<16x32xf32>
    %c4 = arith.constant 4 : index
    %c0_22 = arith.constant 0 : index
    %69 = vector.load %arg4[%c4, %c0_22] : memref<24x128xf32, #tpu.memory_space<vmem>>, vector<1x32xf32>
    %70 = vector.broadcast %69 : vector<1x32xf32> to vector<16x32xf32>
    %71 = arith.addf %68, %70 : vector<16x32xf32>
    %72 = arith.addf %24, %71 : vector<16x32xf32>
    %c5 = arith.constant 5 : index
    %c0_23 = arith.constant 0 : index
    %73 = vector.load %arg4[%c5, %c0_23] : memref<24x128xf32, #tpu.memory_space<vmem>>, vector<1x32xf32>
    %c6 = arith.constant 6 : index
    %c0_24 = arith.constant 0 : index
    %74 = vector.load %arg4[%c6, %c0_24] : memref<24x128xf32, #tpu.memory_space<vmem>>, vector<1x32xf32>
    %cst_25 = arith.constant dense<0.000000e+00> : vector<16xf32>
    %75 = vector.multi_reduction <add>, %72, %cst_25 [1] : vector<16x32xf32> to vector<16xf32>
    %76 = vector.shape_cast %75 : vector<16xf32> to vector<16x1xf32>
    %cst_26 = arith.constant 3.200000e+01 : f32
    %77 = vector.broadcast %cst_26 : f32 to vector<16x1xf32>
    %78 = arith.divf %76, %77 : vector<16x1xf32>
    %79 = vector.broadcast %78 : vector<16x1xf32> to vector<16x32xf32>
    %80 = arith.subf %72, %79 : vector<16x32xf32>
    %81 = arith.mulf %80, %80 : vector<16x32xf32>
    %cst_27 = arith.constant dense<0.000000e+00> : vector<16xf32>
    %82 = vector.multi_reduction <add>, %81, %cst_27 [1] : vector<16x32xf32> to vector<16xf32>
    %83 = vector.shape_cast %82 : vector<16xf32> to vector<16x1xf32>
    %cst_28 = arith.constant 3.200000e+01 : f32
    %84 = vector.broadcast %cst_28 : f32 to vector<16x1xf32>
    %85 = arith.divf %83, %84 : vector<16x1xf32>
    %86 = vector.broadcast %78 : vector<16x1xf32> to vector<16x32xf32>
    %87 = arith.subf %72, %86 : vector<16x32xf32>
    %cst_29 = arith.constant 9.99999996E-13 : f32
    %88 = vector.broadcast %cst_29 : f32 to vector<16x1xf32>
    %89 = arith.addf %85, %88 : vector<16x1xf32>
    %90 = math.rsqrt %89 : vector<16x1xf32>
    %91 = vector.broadcast %90 : vector<16x1xf32> to vector<16x32xf32>
    %92 = arith.mulf %87, %91 : vector<16x32xf32>
    %93 = vector.broadcast %73 : vector<1x32xf32> to vector<16x32xf32>
    %94 = arith.mulf %92, %93 : vector<16x32xf32>
    %95 = vector.broadcast %74 : vector<1x32xf32> to vector<16x32xf32>
    %96 = arith.addf %94, %95 : vector<16x32xf32>
    %97 = arith.truncf %96 : vector<16x32xf32> to vector<16x32xbf16>
    %c0_30 = arith.constant 0 : index
    %c0_31 = arith.constant 0 : index
    %c256 = arith.constant 256 : index
    %98 = vector.load %arg2[%c0_30, %c0_31, %c256] : memref<2x32x384xbf16, #tpu.memory_space<vmem>>, vector<1x32x64xbf16>
    %99 = vector.shape_cast %98 : vector<1x32x64xbf16> to vector<32x64xbf16>
    %cst_32 = arith.constant dense<0.000000e+00> : vector<16x64xf32>
    %100 = tpu.matmul %97, %99, %cst_32 {dimension_numbers = #tpu.dot_dimension_numbers<[1], [0], [0], [1], [0, 0, 1, 1], [], []>} : vector<16x32xbf16>, vector<32x64xbf16>, vector<16x64xf32> -> vector<16x64xf32>
    %c7 = arith.constant 7 : index
    %c0_33 = arith.constant 0 : index
    %101 = vector.load %arg4[%c7, %c0_33] : memref<24x128xf32, #tpu.memory_space<vmem>>, vector<1x64xf32>
    %102 = vector.broadcast %101 : vector<1x64xf32> to vector<16x64xf32>
    %103 = arith.addf %100, %102 : vector<16x64xf32>
    %104 = arith.mulf %103, %103 : vector<16x64xf32>
    %105 = arith.mulf %103, %104 : vector<16x64xf32>
    %cst_34 = arith.constant 4.471500e-02 : f32
    %106 = vector.broadcast %cst_34 : f32 to vector<16x64xf32>
    %107 = arith.mulf %106, %105 : vector<16x64xf32>
    %108 = arith.addf %103, %107 : vector<16x64xf32>
    %cst_35 = arith.constant 0.797884583 : f32
    %109 = vector.broadcast %cst_35 : f32 to vector<16x64xf32>
    %110 = arith.mulf %109, %108 : vector<16x64xf32>
    %111 = math.tanh %110 : vector<16x64xf32>
    %cst_36 = arith.constant 1.000000e+00 : f32
    %112 = vector.broadcast %cst_36 : f32 to vector<16x64xf32>
    %113 = arith.addf %112, %111 : vector<16x64xf32>
    %cst_37 = arith.constant 5.000000e-01 : f32
    %114 = vector.broadcast %cst_37 : f32 to vector<16x64xf32>
    %115 = arith.mulf %114, %113 : vector<16x64xf32>
    %116 = arith.mulf %103, %115 : vector<16x64xf32>
    %117 = arith.truncf %116 : vector<16x64xf32> to vector<16x64xbf16>
    %c0_38 = arith.constant 0 : index
    %c0_39 = arith.constant 0 : index
    %c0_40 = arith.constant 0 : index
    %118 = vector.load %arg3[%c0_38, %c0_39, %c0_40] : memref<2x64x32xbf16, #tpu.memory_space<vmem>>, vector<1x64x32xbf16>
    %119 = vector.shape_cast %118 : vector<1x64x32xbf16> to vector<64x32xbf16>
    %cst_41 = arith.constant dense<0.000000e+00> : vector<16x32xf32>
    %120 = tpu.matmul %117, %119, %cst_41 {dimension_numbers = #tpu.dot_dimension_numbers<[1], [0], [0], [1], [0, 0, 1, 1], [], []>} : vector<16x64xbf16>, vector<64x32xbf16>, vector<16x32xf32> -> vector<16x32xf32>
    %c8 = arith.constant 8 : index
    %c0_42 = arith.constant 0 : index
    %121 = vector.load %arg4[%c8, %c0_42] : memref<24x128xf32, #tpu.memory_space<vmem>>, vector<1x32xf32>
    %122 = vector.broadcast %121 : vector<1x32xf32> to vector<16x32xf32>
    %123 = arith.addf %120, %122 : vector<16x32xf32>
    %124 = arith.addf %96, %123 : vector<16x32xf32>
    %c9 = arith.constant 9 : index
    %c0_43 = arith.constant 0 : index
    %125 = vector.load %arg4[%c9, %c0_43] : memref<24x128xf32, #tpu.memory_space<vmem>>, vector<1x32xf32>
    %c10 = arith.constant 10 : index
    %c0_44 = arith.constant 0 : index
    %126 = vector.load %arg4[%c10, %c0_44] : memref<24x128xf32, #tpu.memory_space<vmem>>, vector<1x32xf32>
    %cst_45 = arith.constant dense<0.000000e+00> : vector<16xf32>
    %127 = vector.multi_reduction <add>, %124, %cst_45 [1] : vector<16x32xf32> to vector<16xf32>
    %128 = vector.shape_cast %127 : vector<16xf32> to vector<16x1xf32>
    %cst_46 = arith.constant 3.200000e+01 : f32
    %129 = vector.broadcast %cst_46 : f32 to vector<16x1xf32>
    %130 = arith.divf %128, %129 : vector<16x1xf32>
    %131 = vector.broadcast %130 : vector<16x1xf32> to vector<16x32xf32>
    %132 = arith.subf %124, %131 : vector<16x32xf32>
    %133 = arith.mulf %132, %132 : vector<16x32xf32>
    %cst_47 = arith.constant dense<0.000000e+00> : vector<16xf32>
    %134 = vector.multi_reduction <add>, %133, %cst_47 [1] : vector<16x32xf32> to vector<16xf32>
    %135 = vector.shape_cast %134 : vector<16xf32> to vector<16x1xf32>
    %cst_48 = arith.constant 3.200000e+01 : f32
    %136 = vector.broadcast %cst_48 : f32 to vector<16x1xf32>
    %137 = arith.divf %135, %136 : vector<16x1xf32>
    %138 = vector.broadcast %130 : vector<16x1xf32> to vector<16x32xf32>
    %139 = arith.subf %124, %138 : vector<16x32xf32>
    %cst_49 = arith.constant 9.99999996E-13 : f32
    %140 = vector.broadcast %cst_49 : f32 to vector<16x1xf32>
    %141 = arith.addf %137, %140 : vector<16x1xf32>
    %142 = math.rsqrt %141 : vector<16x1xf32>
    %143 = vector.broadcast %142 : vector<16x1xf32> to vector<16x32xf32>
    %144 = arith.mulf %139, %143 : vector<16x32xf32>
    %145 = vector.broadcast %125 : vector<1x32xf32> to vector<16x32xf32>
    %146 = arith.mulf %144, %145 : vector<16x32xf32>
    %147 = vector.broadcast %126 : vector<1x32xf32> to vector<16x32xf32>
    %148 = arith.addf %146, %147 : vector<16x32xf32>
    %149 = arith.truncf %148 : vector<16x32xf32> to vector<16x32xbf16>
    %c1_50 = arith.constant 1 : index
    %c0_51 = arith.constant 0 : index
    %c0_52 = arith.constant 0 : index
    %150 = vector.load %arg2[%c1_50, %c0_51, %c0_52] : memref<2x32x384xbf16, #tpu.memory_space<vmem>>, vector<1x32x96xbf16>
    %151 = vector.shape_cast %150 : vector<1x32x96xbf16> to vector<32x96xbf16>
    %cst_53 = arith.constant dense<0.000000e+00> : vector<16x96xf32>
    %152 = tpu.matmul %149, %151, %cst_53 {dimension_numbers = #tpu.dot_dimension_numbers<[1], [0], [0], [1], [0, 0, 1, 1], [], []>} : vector<16x32xbf16>, vector<32x96xbf16>, vector<16x96xf32> -> vector<16x96xf32>
    %c11 = arith.constant 11 : index
    %c0_54 = arith.constant 0 : index
    %153 = vector.load %arg4[%c11, %c0_54] : memref<24x128xf32, #tpu.memory_space<vmem>>, vector<1x96xf32>
    %154 = vector.broadcast %153 : vector<1x96xf32> to vector<16x96xf32>
    %155 = arith.addf %152, %154 : vector<16x96xf32>
    %156 = vector.extract_strided_slice %155 {offsets = [0, 0], sizes = [16, 8], strides = [1, 1]} : vector<16x96xf32> to vector<16x8xf32>
    %157 = vector.extract_strided_slice %155 {offsets = [0, 8], sizes = [16, 8], strides = [1, 1]} : vector<16x96xf32> to vector<16x8xf32>
    %158 = vector.extract_strided_slice %155 {offsets = [0, 16], sizes = [16, 8], strides = [1, 1]} : vector<16x96xf32> to vector<16x8xf32>
    %159 = vector.extract_strided_slice %155 {offsets = [0, 24], sizes = [16, 8], strides = [1, 1]} : vector<16x96xf32> to vector<16x8xf32>
    %160 = tpu.concatenate %156, %157, %158, %159 in 0 : vector<16x8xf32>, vector<16x8xf32>, vector<16x8xf32>, vector<16x8xf32> -> vector<64x8xf32>
    %161 = vector.extract_strided_slice %155 {offsets = [0, 32], sizes = [16, 8], strides = [1, 1]} : vector<16x96xf32> to vector<16x8xf32>
    %162 = vector.extract_strided_slice %155 {offsets = [0, 40], sizes = [16, 8], strides = [1, 1]} : vector<16x96xf32> to vector<16x8xf32>
    %163 = vector.extract_strided_slice %155 {offsets = [0, 48], sizes = [16, 8], strides = [1, 1]} : vector<16x96xf32> to vector<16x8xf32>
    %164 = vector.extract_strided_slice %155 {offsets = [0, 56], sizes = [16, 8], strides = [1, 1]} : vector<16x96xf32> to vector<16x8xf32>
    %165 = tpu.concatenate %161, %162, %163, %164 in 0 : vector<16x8xf32>, vector<16x8xf32>, vector<16x8xf32>, vector<16x8xf32> -> vector<64x8xf32>
    %166 = vector.extract_strided_slice %155 {offsets = [0, 64], sizes = [16, 8], strides = [1, 1]} : vector<16x96xf32> to vector<16x8xf32>
    %167 = vector.extract_strided_slice %155 {offsets = [0, 72], sizes = [16, 8], strides = [1, 1]} : vector<16x96xf32> to vector<16x8xf32>
    %168 = vector.extract_strided_slice %155 {offsets = [0, 80], sizes = [16, 8], strides = [1, 1]} : vector<16x96xf32> to vector<16x8xf32>
    %169 = vector.extract_strided_slice %155 {offsets = [0, 88], sizes = [16, 8], strides = [1, 1]} : vector<16x96xf32> to vector<16x8xf32>
    %170 = tpu.concatenate %166, %167, %168, %169 in 0 : vector<16x8xf32>, vector<16x8xf32>, vector<16x8xf32>, vector<16x8xf32> -> vector<64x8xf32>
    %cst_55 = arith.constant dense<0.000000e+00> : vector<64x64xf32>
    %171 = tpu.matmul %160, %165, %cst_55 {dimension_numbers = #tpu.dot_dimension_numbers<[1], [1], [0], [0], [0, 0, 1, 0], [], []>} : vector<64x8xf32>, vector<64x8xf32>, vector<64x64xf32> -> vector<64x64xf32>
    %172 = arith.addf %171, %25 : vector<64x64xf32>
    %cst_56 = arith.constant dense<0xFF800000> : vector<64xf32>
    %173 = vector.multi_reduction <maximumf>, %172, %cst_56 [1] : vector<64x64xf32> to vector<64xf32>
    %174 = vector.shape_cast %173 : vector<64xf32> to vector<64x1xf32>
    %175 = vector.broadcast %174 : vector<64x1xf32> to vector<64x64xf32>
    %176 = arith.subf %172, %175 : vector<64x64xf32>
    %177 = math.exp %176 : vector<64x64xf32>
    %cst_57 = arith.constant dense<0.000000e+00> : vector<64xf32>
    %178 = vector.multi_reduction <add>, %177, %cst_57 [1] : vector<64x64xf32> to vector<64xf32>
    %179 = vector.shape_cast %178 : vector<64xf32> to vector<64x1xf32>
    %180 = vector.broadcast %179 : vector<64x1xf32> to vector<64x64xf32>
    %181 = arith.divf %177, %180 : vector<64x64xf32>
    %cst_58 = arith.constant dense<0.000000e+00> : vector<64x8xf32>
    %182 = tpu.matmul %181, %170, %cst_58 {dimension_numbers = #tpu.dot_dimension_numbers<[1], [0], [0], [1], [0, 0, 1, 1], [], []>} : vector<64x64xf32>, vector<64x8xf32>, vector<64x8xf32> -> vector<64x8xf32>
    %183 = vector.extract_strided_slice %182 {offsets = [0, 0], sizes = [16, 8], strides = [1, 1]} : vector<64x8xf32> to vector<16x8xf32>
    %184 = vector.extract_strided_slice %182 {offsets = [16, 0], sizes = [16, 8], strides = [1, 1]} : vector<64x8xf32> to vector<16x8xf32>
    %185 = vector.extract_strided_slice %182 {offsets = [32, 0], sizes = [16, 8], strides = [1, 1]} : vector<64x8xf32> to vector<16x8xf32>
    %186 = vector.extract_strided_slice %182 {offsets = [48, 0], sizes = [16, 8], strides = [1, 1]} : vector<64x8xf32> to vector<16x8xf32>
    %187 = tpu.concatenate %183, %184, %185, %186 in 1 : vector<16x8xf32>, vector<16x8xf32>, vector<16x8xf32>, vector<16x8xf32> -> vector<16x32xf32>
    %c1_59 = arith.constant 1 : index
    %c0_60 = arith.constant 0 : index
    %c128_61 = arith.constant 128 : index
    %188 = vector.load %arg2[%c1_59, %c0_60, %c128_61] : memref<2x32x384xbf16, #tpu.memory_space<vmem>>, vector<1x32x32xbf16>
    %189 = vector.shape_cast %188 : vector<1x32x32xbf16> to vector<32x32xbf16>
    %190 = arith.truncf %187 : vector<16x32xf32> to vector<16x32xbf16>
    %cst_62 = arith.constant dense<0.000000e+00> : vector<16x32xf32>
    %191 = tpu.matmul %190, %189, %cst_62 {dimension_numbers = #tpu.dot_dimension_numbers<[1], [0], [0], [1], [0, 0, 1, 1], [], []>} : vector<16x32xbf16>, vector<32x32xbf16>, vector<16x32xf32> -> vector<16x32xf32>
    %c12 = arith.constant 12 : index
    %c0_63 = arith.constant 0 : index
    %192 = vector.load %arg4[%c12, %c0_63] : memref<24x128xf32, #tpu.memory_space<vmem>>, vector<1x32xf32>
    %193 = vector.broadcast %192 : vector<1x32xf32> to vector<16x32xf32>
    %194 = arith.addf %191, %193 : vector<16x32xf32>
    %195 = arith.addf %148, %194 : vector<16x32xf32>
    %c13 = arith.constant 13 : index
    %c0_64 = arith.constant 0 : index
    %196 = vector.load %arg4[%c13, %c0_64] : memref<24x128xf32, #tpu.memory_space<vmem>>, vector<1x32xf32>
    %c14 = arith.constant 14 : index
    %c0_65 = arith.constant 0 : index
    %197 = vector.load %arg4[%c14, %c0_65] : memref<24x128xf32, #tpu.memory_space<vmem>>, vector<1x32xf32>
    %cst_66 = arith.constant dense<0.000000e+00> : vector<16xf32>
    %198 = vector.multi_reduction <add>, %195, %cst_66 [1] : vector<16x32xf32> to vector<16xf32>
    %199 = vector.shape_cast %198 : vector<16xf32> to vector<16x1xf32>
    %cst_67 = arith.constant 3.200000e+01 : f32
    %200 = vector.broadcast %cst_67 : f32 to vector<16x1xf32>
    %201 = arith.divf %199, %200 : vector<16x1xf32>
    %202 = vector.broadcast %201 : vector<16x1xf32> to vector<16x32xf32>
    %203 = arith.subf %195, %202 : vector<16x32xf32>
    %204 = arith.mulf %203, %203 : vector<16x32xf32>
    %cst_68 = arith.constant dense<0.000000e+00> : vector<16xf32>
    %205 = vector.multi_reduction <add>, %204, %cst_68 [1] : vector<16x32xf32> to vector<16xf32>
    %206 = vector.shape_cast %205 : vector<16xf32> to vector<16x1xf32>
    %cst_69 = arith.constant 3.200000e+01 : f32
    %207 = vector.broadcast %cst_69 : f32 to vector<16x1xf32>
    %208 = arith.divf %206, %207 : vector<16x1xf32>
    %209 = vector.broadcast %201 : vector<16x1xf32> to vector<16x32xf32>
    %210 = arith.subf %195, %209 : vector<16x32xf32>
    %cst_70 = arith.constant 9.99999996E-13 : f32
    %211 = vector.broadcast %cst_70 : f32 to vector<16x1xf32>
    %212 = arith.addf %208, %211 : vector<16x1xf32>
    %213 = math.rsqrt %212 : vector<16x1xf32>
    %214 = vector.broadcast %213 : vector<16x1xf32> to vector<16x32xf32>
    %215 = arith.mulf %210, %214 : vector<16x32xf32>
    %216 = vector.broadcast %196 : vector<1x32xf32> to vector<16x32xf32>
    %217 = arith.mulf %215, %216 : vector<16x32xf32>
    %218 = vector.broadcast %197 : vector<1x32xf32> to vector<16x32xf32>
    %219 = arith.addf %217, %218 : vector<16x32xf32>
    %220 = arith.truncf %219 : vector<16x32xf32> to vector<16x32xbf16>
    %c1_71 = arith.constant 1 : index
    %c0_72 = arith.constant 0 : index
    %c256_73 = arith.constant 256 : index
    %221 = vector.load %arg2[%c1_71, %c0_72, %c256_73] : memref<2x32x384xbf16, #tpu.memory_space<vmem>>, vector<1x32x64xbf16>
    %222 = vector.shape_cast %221 : vector<1x32x64xbf16> to vector<32x64xbf16>
    %cst_74 = arith.constant dense<0.000000e+00> : vector<16x64xf32>
    %223 = tpu.matmul %220, %222, %cst_74 {dimension_numbers = #tpu.dot_dimension_numbers<[1], [0], [0], [1], [0, 0, 1, 1], [], []>} : vector<16x32xbf16>, vector<32x64xbf16>, vector<16x64xf32> -> vector<16x64xf32>
    %c15 = arith.constant 15 : index
    %c0_75 = arith.constant 0 : index
    %224 = vector.load %arg4[%c15, %c0_75] : memref<24x128xf32, #tpu.memory_space<vmem>>, vector<1x64xf32>
    %225 = vector.broadcast %224 : vector<1x64xf32> to vector<16x64xf32>
    %226 = arith.addf %223, %225 : vector<16x64xf32>
    %227 = arith.mulf %226, %226 : vector<16x64xf32>
    %228 = arith.mulf %226, %227 : vector<16x64xf32>
    %cst_76 = arith.constant 4.471500e-02 : f32
    %229 = vector.broadcast %cst_76 : f32 to vector<16x64xf32>
    %230 = arith.mulf %229, %228 : vector<16x64xf32>
    %231 = arith.addf %226, %230 : vector<16x64xf32>
    %cst_77 = arith.constant 0.797884583 : f32
    %232 = vector.broadcast %cst_77 : f32 to vector<16x64xf32>
    %233 = arith.mulf %232, %231 : vector<16x64xf32>
    %234 = math.tanh %233 : vector<16x64xf32>
    %cst_78 = arith.constant 1.000000e+00 : f32
    %235 = vector.broadcast %cst_78 : f32 to vector<16x64xf32>
    %236 = arith.addf %235, %234 : vector<16x64xf32>
    %cst_79 = arith.constant 5.000000e-01 : f32
    %237 = vector.broadcast %cst_79 : f32 to vector<16x64xf32>
    %238 = arith.mulf %237, %236 : vector<16x64xf32>
    %239 = arith.mulf %226, %238 : vector<16x64xf32>
    %240 = arith.truncf %239 : vector<16x64xf32> to vector<16x64xbf16>
    %c1_80 = arith.constant 1 : index
    %c0_81 = arith.constant 0 : index
    %c0_82 = arith.constant 0 : index
    %241 = vector.load %arg3[%c1_80, %c0_81, %c0_82] : memref<2x64x32xbf16, #tpu.memory_space<vmem>>, vector<1x64x32xbf16>
    %242 = vector.shape_cast %241 : vector<1x64x32xbf16> to vector<64x32xbf16>
    %cst_83 = arith.constant dense<0.000000e+00> : vector<16x32xf32>
    %243 = tpu.matmul %240, %242, %cst_83 {dimension_numbers = #tpu.dot_dimension_numbers<[1], [0], [0], [1], [0, 0, 1, 1], [], []>} : vector<16x64xbf16>, vector<64x32xbf16>, vector<16x32xf32> -> vector<16x32xf32>
    %c16 = arith.constant 16 : index
    %c0_84 = arith.constant 0 : index
    %244 = vector.load %arg4[%c16, %c0_84] : memref<24x128xf32, #tpu.memory_space<vmem>>, vector<1x32xf32>
    %245 = vector.broadcast %244 : vector<1x32xf32> to vector<16x32xf32>
    %246 = arith.addf %243, %245 : vector<16x32xf32>
    %247 = arith.addf %219, %246 : vector<16x32xf32>
    %c17 = arith.constant 17 : index
    %c0_85 = arith.constant 0 : index
    %248 = vector.load %arg4[%c17, %c0_85] : memref<24x128xf32, #tpu.memory_space<vmem>>, vector<1x32xf32>
    %c18 = arith.constant 18 : index
    %c0_86 = arith.constant 0 : index
    %249 = vector.load %arg4[%c18, %c0_86] : memref<24x128xf32, #tpu.memory_space<vmem>>, vector<1x32xf32>
    %cst_87 = arith.constant dense<0.000000e+00> : vector<16xf32>
    %250 = vector.multi_reduction <add>, %247, %cst_87 [1] : vector<16x32xf32> to vector<16xf32>
    %251 = vector.shape_cast %250 : vector<16xf32> to vector<16x1xf32>
    %cst_88 = arith.constant 3.200000e+01 : f32
    %252 = vector.broadcast %cst_88 : f32 to vector<16x1xf32>
    %253 = arith.divf %251, %252 : vector<16x1xf32>
    %254 = vector.broadcast %253 : vector<16x1xf32> to vector<16x32xf32>
    %255 = arith.subf %247, %254 : vector<16x32xf32>
    %256 = arith.mulf %255, %255 : vector<16x32xf32>
    %cst_89 = arith.constant dense<0.000000e+00> : vector<16xf32>
    %257 = vector.multi_reduction <add>, %256, %cst_89 [1] : vector<16x32xf32> to vector<16xf32>
    %258 = vector.shape_cast %257 : vector<16xf32> to vector<16x1xf32>
    %cst_90 = arith.constant 3.200000e+01 : f32
    %259 = vector.broadcast %cst_90 : f32 to vector<16x1xf32>
    %260 = arith.divf %258, %259 : vector<16x1xf32>
    %261 = vector.broadcast %253 : vector<16x1xf32> to vector<16x32xf32>
    %262 = arith.subf %247, %261 : vector<16x32xf32>
    %cst_91 = arith.constant 9.99999996E-13 : f32
    %263 = vector.broadcast %cst_91 : f32 to vector<16x1xf32>
    %264 = arith.addf %260, %263 : vector<16x1xf32>
    %265 = math.rsqrt %264 : vector<16x1xf32>
    %266 = vector.broadcast %265 : vector<16x1xf32> to vector<16x32xf32>
    %267 = arith.mulf %262, %266 : vector<16x32xf32>
    %268 = vector.broadcast %248 : vector<1x32xf32> to vector<16x32xf32>
    %269 = arith.mulf %267, %268 : vector<16x32xf32>
    %270 = vector.broadcast %249 : vector<1x32xf32> to vector<16x32xf32>
    %271 = arith.addf %269, %270 : vector<16x32xf32>
    %272 = vector.extract_strided_slice %271 {offsets = [0, 0], sizes = [8, 32], strides = [1, 1]} : vector<16x32xf32> to vector<8x32xf32>
    %cst_92 = arith.constant dense<0.000000e+00> : vector<32xf32>
    %273 = vector.multi_reduction <add>, %272, %cst_92 [0] : vector<8x32xf32> to vector<32xf32>
    %274 = vector.shape_cast %273 : vector<32xf32> to vector<1x32xf32>
    %cst_93 = arith.constant 8.000000e+00 : f32
    %275 = vector.broadcast %cst_93 : f32 to vector<1x32xf32>
    %276 = arith.divf %274, %275 : vector<1x32xf32>
    %277 = vector.extract_strided_slice %271 {offsets = [8, 0], sizes = [8, 32], strides = [1, 1]} : vector<16x32xf32> to vector<8x32xf32>
    %cst_94 = arith.constant dense<0.000000e+00> : vector<32xf32>
    %278 = vector.multi_reduction <add>, %277, %cst_94 [0] : vector<8x32xf32> to vector<32xf32>
    %279 = vector.shape_cast %278 : vector<32xf32> to vector<1x32xf32>
    %cst_95 = arith.constant 8.000000e+00 : f32
    %280 = vector.broadcast %cst_95 : f32 to vector<1x32xf32>
    %281 = arith.divf %279, %280 : vector<1x32xf32>
    %282 = tpu.concatenate %276, %281 in 0 : vector<1x32xf32>, vector<1x32xf32> -> vector<2x32xf32>
    %c0_96 = arith.constant 0 : index
    %c0_97 = arith.constant 0 : index
    %c320 = arith.constant 320 : index
    %283 = vector.load %arg2[%c0_96, %c0_97, %c320] : memref<2x32x384xbf16, #tpu.memory_space<vmem>>, vector<1x32x16xbf16>
    %284 = vector.shape_cast %283 : vector<1x32x16xbf16> to vector<32x16xbf16>
    %285 = arith.truncf %282 : vector<2x32xf32> to vector<2x32xbf16>
    %cst_98 = arith.constant dense<0.000000e+00> : vector<2x16xf32>
    %286 = tpu.matmul %285, %284, %cst_98 {dimension_numbers = #tpu.dot_dimension_numbers<[1], [0], [0], [1], [0, 0, 1, 1], [], []>} : vector<2x32xbf16>, vector<32x16xbf16>, vector<2x16xf32> -> vector<2x16xf32>
    %c2 = arith.constant 2 : index
    %c0_99 = arith.constant 0 : index
    %287 = vector.load %arg4[%c2, %c0_99] : memref<24x128xf32, #tpu.memory_space<vmem>>, vector<1x16xf32>
    %288 = vector.broadcast %287 : vector<1x16xf32> to vector<2x16xf32>
    %289 = arith.addf %286, %288 : vector<2x16xf32>
    %290 = math.tanh %289 : vector<2x16xf32>
    %c0_100 = arith.constant 0 : index
    %c0_101 = arith.constant 0 : index
    %291 = vector.load %arg5[%c0_100, %c0_101] : memref<2x16xf32, #tpu.memory_space<vmem>>, vector<2x16xf32>
    tpu.vector_store %arg5[%c0_100, %c0_101], %290 {strides = array<i32>} : memref<2x16xf32, #tpu.memory_space<vmem>>, vector<2x16xf32>,
    return
  }
}

</mosaic_0001>

<bundles_post_ra>
// kernel: tpu_custom_call.1
= control target key start
LH: loop header
LB: loop body
LE: loop exit
PB: predicated region body
PF: predicated region fallthrough
CT: control target
= control target key end

     0   :  { %10 = vsyncpa [#allocation3], 0  ;;  %s3045_s0 = inlined_call_operand.hbm [shape: f32[16,32], index: 0, kind: input, shape index: {}]   ;;  %s3046_s1 = inlined_call_operand.hbm [shape: f32[64,64], index: 1, kind: input, shape index: {}]   ;;  %s3047_s2 = inlined_call_operand.vmem [shape: bf16[2,32,384], index: 2, kind: input, shape index: {}]   ;;  %s3048_s3 = inlined_call_operand.vmem [shape: bf16[2,64,32], index: 3, kind: input, shape index: {}]   ;;  %s3049_s4 = inlined_call_operand.hbm [shape: f32[24,128], index: 4, kind: input, shape index: {}]   ;;  %s3050_s5 = inlined_call_operand.hbm [shape: f32[2,16], index: 5, kind: output, shape index: {}]  }
   0x1   :  { %11 = vsyncpa [#allocation6], 0 }
   0x2   :  { %12 = vsyncpa [#allocation4], 0  ;;  %s2502_s18 = smov [#allocation5]   ;;  %s2503_s20 = smov [#allocation2]  }
   0x3   :  { %s30_s19 = sshll.u32 %s2502_s18, 4  ;;  %s18_s21 = sshll.u32 %s2503_s20, 4  ;;  %s31_s19 = int_to_ptr.vmem [resolvable:$true] %s30_s19  ;;  %s19_s21 = int_to_ptr.vmem [resolvable:$true] %s18_s21 }
   0x4   :  { %s2424_s22 = scalar_lea.vmem %s31_s19, 1024  ;;  %p2429_p1 = scmp.lt.s32.totalorder %s31_s19, %s31_s19 }
   0x5   :  { %p2425_p0 = scmp.ne.s32.totalorder %s31_s19, %s2424_s22  ;;  %p2430_p2 = scmp.lt.s32.totalorder %s2424_s22, %s2424_s22 }
   0x7   :  { %p2431_p3 = por %p2430_p2, %p2429_p1 }
   0x9   :  { %p2432_p4 = pnand %p2431_p3, %p2425_p0 }
   0xb   :  { %2435 = shalt.err (!%p2432_p4)
}
   0xc   :  { %s2504_s23 = smov 128   ;;  %s2505_s24 = smov 8  }
   0xd   :  { %36 = dma.hbm_to_vmem [thread:$0]  %s3046_s1, 1024, %s31_s19, [#allocation6], %s2504_s23, %s2504_s23, %s2505_s24  }
   0xe   :  { %s2444_s27 = scalar_lea.vmem %s19_s21, 256  ;;  %p2449_p6 = scmp.lt.s32.totalorder %s19_s21, %s19_s21 }
   0xf   :  { %p2445_p5 = scmp.ne.s32.totalorder %s19_s21, %s2444_s27  ;;  %p2450_p7 = scmp.lt.s32.totalorder %s2444_s27, %s2444_s27 }
  0x11   :  { %p2451_p8 = por %p2450_p7, %p2449_p6 }
  0x13   :  { %p2452_p9 = pnand %p2451_p8, %p2445_p5 }
  0x15   :  { %2455 = shalt.err (!%p2452_p9)
}
  0x16   :  { %24 = dma.hbm_to_vmem [thread:$0]  %s3045_s0, 256, %s19_s21, [#allocation3], %s2504_s23, %s2504_s23, %s2505_s24  }
  0x17   :  { %s2506_s30 = smov [#allocation7]  }
  0x18   :  { %s46_s6 = sshll.u32 %s2506_s30, 4  ;;  %s47_s6 = int_to_ptr.vmem [resolvable:$true] %s46_s6 }
  0x19   :  { %s2464_s7 = scalar_lea.vmem %s47_s6, 384  ;;  %p2469_p11 = scmp.lt.s32.totalorder %s47_s6, %s47_s6 }
  0x1a   :  { %p2465_p10 = scmp.ne.s32.totalorder %s47_s6, %s2464_s7  ;;  %p2470_p12 = scmp.lt.s32.totalorder %s2464_s7, %s2464_s7 }
  0x1c   :  { %p2471_p13 = por %p2470_p12, %p2469_p11 }
  0x1e   :  { %p2472_p0 = pnand %p2471_p13, %p2465_p10 }
  0x20   :  { %2475 = shalt.err (!%p2472_p0)
}
  0x21   :  { %52 = dma.hbm_to_vmem [thread:$0]  %s3049_s4, 384, %s47_s6, [#allocation6], %s2504_s23, %s2504_s23, %s2505_s24  }
  0x22   :  { %2496 = dma.done.wait [#allocation3], 256  }
  0x23   :  { %2497 = vsyncadd [#allocation3], 4294967040 }
  0x24   :  { %2498 = dma.done.wait [#allocation6], 1408  }
  0x25   :  { %2499 = vsyncadd [#allocation6], 4294965888  ;;  %vm67_vm0 = vcmask 261120   ;;  %v63_v0 = vld [vmem:[#allocation2] sm:$0xff]  ;;  %v64_v1 = vld [vmem:[#allocation2 + $0x8] sm:$0xff]  ;;  %v2507_v15 = vmov 0.0  }
  0x26   :  { %v68_v2 = vsel %vm67_vm0, %v63_v0, 0.0  ;;  %v71_v3 = vsel %vm67_vm0, %v64_v1, 0.0  ;;  %v2302_v14 = vld [vmem:[%s3047_s2 + $0x18] ss:$12 sps:$4 sm:$0xff]   ;;  %2065 = vmatprep.subr.bf16.mxu0 %v2507_v15  ;;  %vm2508_vm1 = vmmov 0   ;;  %vm211_vm2 = vcmask 64512  }
  0x27   :  { %69 = vadd.xlane.f32.xlu0 %v68_v2  ;;  %2069 = vmatprep.mubr.msk.bf16.mxu0 %vm2508_vm1, %v2507_v15  ;;  %v2303_v16 = vld [vmem:[%s3047_s2] ss:$12 sps:$4 sm:$0xff]   ;;  %v1854_v25 = vld [vmem:[#allocation7] ss:$0 sm:$0xff]  ;;  %v1855_v29 = vld [vmem:[#allocation7 + $0x1] ss:$0 sm:$0xff] }
  0x28   :  { %2066 = vmatpush3.bf16.msra.mxu0 %v2302_v14  ;;  %v1856_v34 = vld [vmem:[#allocation7 + $0x3] ss:$0 sm:$0xff]  ;;  %s2509_s11 = smov 104   ;;  %s2510_s12 = smov 112   ;;  %v2659_v55 = vld [vmem:[#allocation5 + $0x8] sm:$0xff]  ;;  %vm349_vm3 = vcmask 523264  }
  0x29   :  { %2067 = vmatprep.subr.bf16.mxu0 %v2507_v15  ;;  %s2511_s13 = smov 120   ;;  %s2512_s14 = smov 96   ;;  %v2661_v57 = vld [vmem:[#allocation5] sm:$0xff]  ;;  %v2664_v60 = vld [vmem:[#allocation5 + $0x18] sm:$0xff]  ;;  %vm617_vm4 = vcmask 130048   ;;  %vm620_vm5 = vcmask 195584  }
  0x2a   :  { %s2513_s15 = smov 64   ;;  %s2514_s20 = smov 16   ;;  %vm1778_vm6 = vcmask 1040384   ;;  %vm1836_vm7 = vcmask 123904  }
  0x2b   :  { %72 = vadd.xlane.f32.xlu0 %v71_v3  ;;  %v2670_v3 = vld [vmem:[#allocation5 + $0x10] sm:$0xff]  ;;  %s2515_s21 = smov 24  }
  0x2c   :  { %2068 = vmatpush3.bf16.msra.mxu0 %v2303_v16 }
  0xb0   :  { %v70_v4 = vpop.xlane.xlu0 %69 }
  0xb1   :  { %v75_v5 = vmul.f32 0.03125, %v70_v4  ;;  %v2672_v4 = vld [vmem:[#allocation5 + $0x28] sm:$0xff] }
  0xb3   :  { %v77_v6 = vsub.f32 %v63_v0, %v75_v5 }
  0xb4   :  { %v73_v7 = vpop.xlane.xlu0 %72 }
  0xb5   :  { %v76_v8 = vmul.f32 0.03125, %v73_v7  ;;  %v79_v9 = vmul.f32 %v77_v6, %v77_v6 }
  0xb7   :  { %v78_v10 = vsub.f32 %v64_v1, %v76_v8  ;;  %v81_v11 = vsel %vm67_vm0, %v79_v9, 0.0 }
  0xb8   :  { %82 = vadd.xlane.f32.xlu1 %v81_v11  ;;  %v2679_v11 = vld [vmem:[#allocation5 + $0x38] sm:$0xff] }
  0xb9   :  { %v80_v12 = vmul.f32 %v78_v10, %v78_v10 }
  0xbb   :  { %v84_v13 = vsel %vm67_vm0, %v80_v12, 0.0 }
  0xbc   :  { %85 = vadd.xlane.f32.xlu1 %v84_v13 }
 0x141   :  { %v83_v17 = vpop.xlane.xlu1 %82 }
 0x142   :  { %v87_v18 = vmul.f32 0.03125, %v83_v17 }
 0x144   :  { %v89_v19 = vadd.f32 1e-12, %v87_v18 }
 0x145   :  { %v86_v20 = vpop.xlane.xlu1 %85 }
 0x146   :  { %2322 = vrsqrt.f32 %v89_v19  ;;  %v88_v21 = vmul.f32 0.03125, %v86_v20  ;;  %v2685_v19 = vld [vmem:[#allocation5 + $0x30] sm:$0xff] }
 0x148   :  { %v90_v22 = vadd.f32 1e-12, %v88_v21 }
 0x14a   :  { %2324 = vrsqrt.f32 %v90_v22 }
 0x153   :  { %v2323_v23 = vpop.eup %2322 }
 0x154   :  { %v93_v24 = vmul.f32 %v2323_v23, %v77_v6 }
 0x156   :  { %v99_v28 = vmul.f32 %v1854_v25, %v93_v24 }
 0x157   :  { %v2325_v26 = vpop.eup %2324 }
 0x158   :  { %v94_v27 = vmul.f32 %v2325_v26, %v78_v10  ;;  %v2573_v31 = vadd.f32 %v1855_v29, %v99_v28  ;;  %v2677_v10 = vld [vmem:[#allocation5 + $0x20] sm:$0xff] }
 0x15a   :  { %v100_v30 = vmul.f32 %v1854_v25, %v94_v27 }
 0x15c   :  { %v2575_v32 = vadd.f32 %v1855_v29, %v100_v30 }
 0x15e   :  { %v115_v33 = vpack.c.bf16 %v2575_v32, %v2573_v31 }
 0x160   :  { %2070 = vmatmul.mubr.msk.bf16.vlgmr.msra.gmra.mxu0 %vm67_vm0, %v115_v33 }
 0x220   :  { %v174_v35 = vpop.f32.mrf.mxu0 }
 0x221   :  { %v2580_v36 = vadd.f32 %v1856_v34, %v174_v35 }
 0x222   :  { %v2071_v37 = vpop.f32.mrf.mxu0 }
 0x223   :  { %191 = vrot.lane.b32.xlu1 %v2580_v36, %s2509_s11  ;;  %2089 = vmatprep.mubr.msk.f32.mxu1 %vm211_vm2, %v2580_v36 }
 0x224   :  { %v177_v38 = vpop.f32.mrf.mxu0 }
 0x225   :  { %v2586_v39 = vadd.f32 %v1856_v34, %v177_v38 }
 0x226   :  { %v2072_v40 = vpop.f32.mrf.mxu0 }
 0x227   :  { %189 = vrot.lane.b32.xlu1 %v2586_v39, %s2510_s12  ;;  %193 = vrot.lane.b32.xlu0 %v2586_v39, %s2509_s11 }
 0x22b   :  { %187 = vrot.lane.b32.xlu1 %v2580_v36, %s2510_s12  ;;  %185 = vrot.lane.b32.xlu0 %v2586_v39, %s2511_s13 }
 0x22f   :  { %183 = vrot.lane.b32.xlu1 %v2580_v36, %s2511_s13 }
 0x295   :  { %v2598_v41 = vpop.permute.xlu1 %191 }
 0x296   :  { %207 = vrot.lane.b32.xlu1 %v2598_v41, %s2512_s14 }
 0x299   :  { %v2602_v42 = vpop.permute.xlu1 %189  ;;  %v2604_v43 = vpop.permute.xlu0 %193 }
 0x29a   :  { %209 = vrot.lane.b32.xlu0 %v2604_v43, %s2512_s14 }
 0x29d   :  { %v2608_v44 = vpop.permute.xlu1 %187  ;;  %v2614_v45 = vpop.permute.xlu0 %185 }
 0x29e   :  { %203 = vrot.lane.b32.xlu1 %v2608_v44, %s2512_s14  ;;  %205 = vrot.lane.b32.xlu0 %v2602_v42, %s2512_s14 }
 0x2a1   :  { %v2616_v46 = vpop.permute.xlu1 %183 }
 0x2a2   :  { %199 = vrot.lane.b32.xlu1 %v2616_v46, %s2512_s14  ;;  %201 = vrot.lane.b32.xlu0 %v2614_v45, %s2512_s14 }
 0x2a6   :  { %195 = vrot.lane.b32.xlu1 %v2580_v36, %s2512_s14  ;;  %197 = vrot.lane.b32.xlu0 %v2586_v39, %s2512_s14 }
 0x308   :  { %v208_v48 = vpop.permute.xlu1 %207 }
 0x30c   :  { %v210_v47 = vpop.permute.xlu0 %209 }
 0x30d   :  { %2073 = vmatprep.subr.msk.mxu1 %vm211_vm2, %v210_v47 }
 0x30e   :  { %2074 = vmatpush3.xpose.msk.msra.mxu1 %vm211_vm2, %v210_v47 }
 0x30f   :  { %2075 = vmatprep.subr.msk.mxu1 %vm211_vm2, %v208_v48 }
 0x310   :  { %v206_v49 = vpop.permute.xlu0 %205  ;;  %v204_v50 = vpop.permute.xlu1 %203 }
 0x312   :  { %2076 = vmatpush3.xpose.msk.msra.mxu1 %vm211_vm2, %v208_v48 }
 0x313   :  { %2077 = vmatprep.subr.msk.mxu1 %vm211_vm2, %v206_v49 }
 0x314   :  { %v202_v51 = vpop.permute.xlu0 %201  ;;  %v200_v52 = vpop.permute.xlu1 %199 }
 0x316   :  { %2078 = vmatpush3.xpose.msk.msra.mxu1 %vm211_vm2, %v206_v49 }
 0x317   :  { %2079 = vmatprep.subr.msk.mxu1 %vm211_vm2, %v204_v50 }
 0x318   :  { %v198_v53 = vpop.permute.xlu0 %197  ;;  %v196_v54 = vpop.permute.xlu1 %195 }
 0x31a   :  { %2080 = vmatpush3.xpose.msk.msra.mxu1 %vm211_vm2, %v204_v50 }
 0x31b   :  { %2081 = vmatprep.subr.msk.mxu1 %vm211_vm2, %v202_v51 }
 0x31e   :  { %2082 = vmatpush3.xpose.msk.msra.mxu1 %vm211_vm2, %v202_v51 }
 0x31f   :  { %2083 = vmatprep.subr.msk.mxu1 %vm211_vm2, %v200_v52 }
 0x322   :  { %2084 = vmatpush3.xpose.msk.msra.mxu1 %vm211_vm2, %v200_v52 }
 0x323   :  { %2085 = vmatprep.subr.msk.mxu1 %vm211_vm2, %v198_v53 }
 0x326   :  { %2086 = vmatpush3.xpose.msk.msra.mxu1 %vm211_vm2, %v198_v53 }
 0x327   :  { %2087 = vmatprep.subr.msk.mxu1 %vm211_vm2, %v196_v54 }
 0x32a   :  { %2088 = vmatpush3.xpose.msk.msra.mxu1 %vm211_vm2, %v196_v54 }
 0x32b   :  { %2145 = vmatprep.subr.bf16.mxu1 %v2507_v15 }
 0x32d   :  { %2090 = vmatmul.mubr.msk.f32.vlgmr.msra.gmra.mxu1 %vm211_vm2, %v2586_v39 }
 0x32e   :  { %2092 = vmatprep.mubr.msk.f32.mxu1 %vm211_vm2, %v2616_v46 }
 0x331   :  { %2093 = vmatmul.mubr.msk.f32.gmra.mxu1 %vm211_vm2, %v2614_v45 }
 0x332   :  { %2095 = vmatprep.mubr.msk.f32.mxu1 %vm211_vm2, %v2608_v44 }
 0x335   :  { %2096 = vmatmul.mubr.msk.f32.gmra.mxu1 %vm211_vm2, %v2602_v42 }
 0x336   :  { %2098 = vmatprep.mubr.msk.f32.mxu1 %vm211_vm2, %v2598_v41 }
 0x339   :  { %2099 = vmatmul.mubr.msk.f32.gmra.mxu1 %vm211_vm2, %v2604_v43 }
 0x33a   :  { %2153 = vmatprep.mubr.msk.bf16.mxu1 %vm2508_vm1, %v2507_v15 }
 0x3ed   :  { %v2091_v56 = vpop.f32.mrf.mxu1 }
 0x3ee   :  { %v316_v58 = vadd.f32 %v2091_v56, %v2659_v55 }
 0x3ef   :  { %v310_v59 = vpop.f32.mrf.mxu1 }
 0x3f0   :  { %v311_v61 = vadd.f32 %v310_v59, %v2661_v57  ;;  %v353_v62 = vsel %vm349_vm3, %v316_v58, -inf }
 0x3f1   :  { %354 = vmax.xlane.f32.xlu1 %v353_v62  ;;  %v2094_v63 = vpop.f32.mrf.mxu1 }
 0x3f2   :  { %v326_v0 = vadd.f32 %v2094_v63, %v2664_v60  ;;  %v350_v1 = vsel %vm349_vm3, %v311_v61, -inf }
 0x3f3   :  { %v320_v2 = vpop.f32.mrf.mxu1  ;;  %351 = vmax.xlane.f32.xlu0 %v350_v1 }
 0x3f4   :  { %v321_v6 = vadd.f32 %v320_v2, %v2670_v3  ;;  %v359_v8 = vsel %vm349_vm3, %v326_v0, -inf }
 0x3f5   :  { %v2097_v5 = vpop.f32.mrf.mxu1 }
 0x3f6   :  { %v336_v7 = vadd.f32 %v2097_v5, %v2672_v4  ;;  %v356_v17 = vsel %vm349_vm3, %v321_v6, -inf }
 0x3f7   :  { %v330_v9 = vpop.f32.mrf.mxu1  ;;  %360 = vmax.xlane.f32.xlu0 %v359_v8 }
 0x3f8   :  { %v365_v12 = vsel %vm349_vm3, %v336_v7, -inf  ;;  %v331_v14 = vadd.f32 %v330_v9, %v2677_v10 }
 0x3f9   :  { %366 = vmax.xlane.f32.xlu1 %v365_v12  ;;  %v2100_v13 = vpop.f32.mrf.mxu1 }
 0x3fa   :  { %v346_v16 = vadd.f32 %v2100_v13, %v2679_v11  ;;  %v362_v22 = vsel %vm349_vm3, %v331_v14, -inf }
 0x3fb   :  { %v340_v18 = vpop.f32.mrf.mxu1  ;;  %357 = vmax.xlane.f32.xlu0 %v356_v17 }
 0x3fc   :  { %v371_v20 = vsel %vm349_vm3, %v346_v16, -inf  ;;  %v341_v21 = vadd.f32 %v340_v18, %v2685_v19 }
 0x3fd   :  { %372 = vmax.xlane.f32.xlu1 %v371_v20 }
 0x3fe   :  { %v368_v23 = vsel %vm349_vm3, %v341_v21, -inf }
 0x3ff   :  { %363 = vmax.xlane.f32.xlu0 %v362_v22 }
 0x403   :  { %369 = vmax.xlane.f32.xlu0 %v368_v23 }
 0x40e   :  { %450 = vrot.lane.b32.xlu1 %v2598_v41, %s2513_s15 }
 0x412   :  { %448 = vrot.lane.b32.xlu1 %v2602_v42, %s2513_s15 }
 0x416   :  { %446 = vrot.lane.b32.xlu1 %v2608_v44, %s2513_s15 }
 0x419   :  { %452 = vrot.lane.b32.xlu0 %v2604_v43, %s2513_s15 }
 0x41a   :  { %442 = vrot.lane.b32.xlu1 %v2616_v46, %s2513_s15 }
 0x41d   :  { %444 = vrot.lane.b32.xlu0 %v2614_v45, %s2513_s15 }
 0x47a   :  { %v355_v24 = vpop.xlane.xlu1 %354 }
 0x47b   :  { %v375_v25 = vsub.f32 %v316_v58, %v355_v24 }
 0x47c   :  { %v352_v26 = vpop.xlane.xlu0 %351 }
 0x47d   :  { %v384_v27 = vmul.f32 1.442695, %v375_v25  ;;  %v374_v28 = vsub.f32 %v311_v61, %v352_v26 }
 0x47f   :  { %2326 = vpow2.f32 %v384_v27  ;;  %v382_v29 = vmul.f32 1.442695, %v374_v28 }
 0x480   :  { %v361_v30 = vpop.xlane.xlu0 %360 }
 0x481   :  { %2328 = vpow2.f32 %v382_v29  ;;  %v377_v33 = vsub.f32 %v326_v0, %v361_v30 }
 0x482   :  { %v367_v34 = vpop.xlane.xlu1 %366 }
 0x483   :  { %v388_v35 = vmul.f32 1.442695, %v377_v33  ;;  %v379_v37 = vsub.f32 %v336_v7, %v367_v34 }
 0x484   :  { %v358_v38 = vpop.xlane.xlu0 %357 }
 0x485   :  { %2330 = vpow2.f32 %v388_v35  ;;  %v392_v40 = vmul.f32 1.442695, %v379_v37  ;;  %v376_v41 = vsub.f32 %v321_v6, %v358_v38 }
 0x486   :  { %v373_v42 = vpop.xlane.xlu1 %372 }
 0x487   :  { %2332 = vpow2.f32 %v392_v40  ;;  %v386_v43 = vmul.f32 1.442695, %v376_v41  ;;  %v381_v44 = vsub.f32 %v346_v16, %v373_v42 }
 0x488   :  { %v364_v45 = vpop.xlane.xlu0 %363 }
 0x489   :  { %2334 = vpow2.f32 %v386_v43  ;;  %v396_v46 = vmul.f32 1.442695, %v381_v44  ;;  %v378_v47 = vsub.f32 %v331_v14, %v364_v45 }
 0x48a   :  { %v451_v48 = vpop.permute.xlu1 %450 }
 0x48b   :  { %2336 = vpow2.f32 %v396_v46  ;;  %v390_v49 = vmul.f32 1.442695, %v378_v47  ;;  %v2304_v47 = vld [vmem:[%s3047_s2 + $0x1c] ss:$12 sps:$4 sm:$0xff]  }
 0x48c   :  { %v2703_v50 = vpop.eup %2326  ;;  %v370_v51 = vpop.xlane.xlu0 %369 }
 0x48d   :  { %2338 = vpow2.f32 %v390_v49  ;;  %v380_v52 = vsub.f32 %v341_v21, %v370_v51  ;;  %v401_v53 = vsel %vm349_vm3, %v2703_v50, 0.0 }
 0x48e   :  { %v2329_v54 = vpop.eup %2328  ;;  %402 = vadd.xlane.f32.xlu1 %v401_v53  ;;  %v449_v58 = vpop.permute.xlu1 %448 }
 0x48f   :  { %v394_v56 = vmul.f32 1.442695, %v380_v52  ;;  %v398_v59 = vsel %vm349_vm3, %v2329_v54, 0.0 }
 0x490   :  { %399 = vadd.xlane.f32.xlu0 %v398_v59  ;;  %v453_v61 = vpop.permute.xlu0 %452 }
 0x491   :  { %2340 = vpow2.f32 %v394_v56  ;;  %2101 = vmatprep.subr.mxu0 %v453_v61 }
 0x492   :  { %v2708_v62 = vpop.eup %2330  ;;  %2102 = vmatpush3.msra.mxu0 %v453_v61  ;;  %v447_v1 = vpop.permute.xlu1 %446 }
 0x493   :  { %2103 = vmatprep.subr.mxu0 %v451_v48  ;;  %v407_v63 = vsel %vm349_vm3, %v2708_v62, 0.0 }
 0x494   :  { %v2712_v0 = vpop.eup %2332  ;;  %408 = vadd.xlane.f32.xlu1 %v407_v63  ;;  %2104 = vmatpush3.msra.mxu0 %v451_v48  ;;  %v445_v8 = vpop.permute.xlu0 %444 }
 0x495   :  { %2105 = vmatprep.subr.mxu0 %v449_v58  ;;  %v413_v5 = vsel %vm349_vm3, %v2712_v0, 0.0 }
 0x496   :  { %v2335_v2 = vpop.eup %2334  ;;  %2106 = vmatpush3.msra.mxu0 %v449_v58  ;;  %v443_v12 = vpop.permute.xlu1 %442 }
 0x497   :  { %2107 = vmatprep.subr.mxu0 %v447_v1  ;;  %v404_v6 = vsel %vm349_vm3, %v2335_v2, 0.0 }
 0x498   :  { %v2717_v7 = vpop.eup %2336  ;;  %414 = vadd.xlane.f32.xlu1 %v413_v5  ;;  %405 = vadd.xlane.f32.xlu0 %v404_v6 }
 0x499   :  { %2108 = vmatpush3.msra.mxu0 %v447_v1  ;;  %v419_v13 = vsel %vm349_vm3, %v2717_v7, 0.0 }
 0x49a   :  { %v2339_v9 = vpop.eup %2338  ;;  %2109 = vmatprep.subr.mxu0 %v445_v8 }
 0x49b   :  { %2110 = vmatpush3.msra.mxu0 %v445_v8  ;;  %v410_v14 = vsel %vm349_vm3, %v2339_v9, 0.0 }
 0x49c   :  { %2111 = vmatprep.subr.mxu0 %v443_v12  ;;  %420 = vadd.xlane.f32.xlu1 %v419_v13 }
 0x49d   :  { %411 = vadd.xlane.f32.xlu0 %v410_v14  ;;  %2112 = vmatpush3.msra.mxu0 %v443_v12 }
 0x49e   :  { %v2341_v16 = vpop.eup %2340 }
 0x49f   :  { %v416_v17 = vsel %vm349_vm3, %v2341_v16, 0.0 }
 0x4a1   :  { %417 = vadd.xlane.f32.xlu0 %v416_v17 }
 0x4ad   :  { %438 = vrot.lane.b32.xlu1 %v2580_v36, %s2513_s15 }
 0x4b7   :  { %440 = vrot.lane.b32.xlu0 %v2586_v39, %s2513_s15 }
 0x517   :  { %v403_v20 = vpop.xlane.xlu1 %402 }
 0x519   :  { %v400_v18 = vpop.xlane.xlu0 %399 }
 0x51a   :  { %2342 = vrcp.f32 %v400_v18 }
 0x51b   :  { %2344 = vrcp.f32 %v403_v20 }
 0x51d   :  { %v409_v21 = vpop.xlane.xlu1 %408 }
 0x521   :  { %v406_v22 = vpop.xlane.xlu0 %405  ;;  %v415_v23 = vpop.xlane.xlu1 %414 }
 0x522   :  { %2346 = vrcp.f32 %v406_v22 }
 0x523   :  { %2348 = vrcp.f32 %v409_v21  ;;  %v1884_v21 = vld [vmem:[#allocation7 + $0x4] ss:$0 sm:$0xff] }
 0x525   :  { %v421_v27 = vpop.xlane.xlu1 %420 }
 0x526   :  { %v412_v24 = vpop.xlane.xlu0 %411 }
 0x527   :  { %v2343_v25 = vpop.eup %2342  ;;  %2350 = vrcp.f32 %v412_v24 }
 0x528   :  { %v423_v26 = vmul.f32 %v2343_v25, %v2329_v54  ;;  %2352 = vrcp.f32 %v415_v23  ;;  %v2345_v36 = vpop.eup %2344 }
 0x529   :  { %v439_v30 = vpop.permute.xlu1 %438  ;;  %v425_v33 = vmul.f32 %v2345_v36, %v2703_v50  ;;  %v2305_v50 = vld [vmem:[%s3047_s2 + $0x4] ss:$12 sps:$4 sm:$0xff]  }
 0x52a   :  { %v418_v28 = vpop.xlane.xlu0 %417  ;;  %2117 = vmatprep.mubr.msk.f32.mxu0 %vm349_vm3, %v423_v26 }
 0x52b   :  { %2354 = vrcp.f32 %v418_v28 }
 0x52c   :  { %2356 = vrcp.f32 %v421_v27 }
 0x52e   :  { %v441_v39 = vpop.permute.xlu0 %440 }
 0x52f   :  { %2113 = vmatprep.subr.mxu0 %v441_v39  ;;  %v2347_v29 = vpop.eup %2346 }
 0x530   :  { %2114 = vmatpush3.msra.mxu0 %v441_v39  ;;  %v427_v34 = vmul.f32 %v2347_v29, %v2335_v2  ;;  %v2349_v35 = vpop.eup %2348 }
 0x531   :  { %2115 = vmatprep.subr.mxu0 %v439_v30  ;;  %v429_v38 = vmul.f32 %v2349_v35, %v2708_v62 }
 0x532   :  { %2116 = vmatpush3.msra.mxu0 %v439_v30 }
 0x533   :  { %2118 = vmatmul.mubr.msk.f32.vlgmr.msra.gmra.mxu0 %vm349_vm3, %v425_v33  ;;  %2129 = vmatprep.subr.bf16.mxu0 %v2507_v15 }
 0x534   :  { %v2351_v37 = vpop.eup %2350  ;;  %2120 = vmatprep.mubr.msk.f32.mxu0 %vm349_vm3, %v427_v34  ;;  %2130 = vmatpush3.bf16.msra.mxu0 %v2304_v47 }
 0x535   :  { %v431_v40 = vmul.f32 %v2351_v37, %v2339_v9  ;;  %v2353_v41 = vpop.eup %2352  ;;  %2131 = vmatprep.subr.bf16.mxu0 %v2507_v15 }
 0x536   :  { %v433_v43 = vmul.f32 %v2353_v41, %v2712_v0 }
 0x537   :  { %2121 = vmatmul.mubr.msk.f32.gmra.mxu0 %vm349_vm3, %v429_v38 }
 0x538   :  { %v2355_v42 = vpop.eup %2354  ;;  %2123 = vmatprep.mubr.msk.f32.mxu0 %vm349_vm3, %v431_v40  ;;  %2132 = vmatpush3.bf16.msra.mxu0 %v2305_v50 }
 0x539   :  { %v435_v44 = vmul.f32 %v2355_v42, %v2341_v16  ;;  %v2357_v45 = vpop.eup %2356  ;;  %2137 = vmatprep.subr.bf16.mxu0 %v2507_v15 }
 0x53a   :  { %v437_v46 = vmul.f32 %v2357_v45, %v2717_v7 }
 0x53b   :  { %2124 = vmatmul.mubr.msk.f32.gmra.mxu0 %vm349_vm3, %v433_v43  ;;  %v2777_v43 = vld [vmem:[%s3047_s2 + $0x8] ss:$12 sps:$4 sm:$0xff]  }
 0x53c   :  { %2126 = vmatprep.mubr.msk.f32.mxu0 %vm349_vm3, %v435_v44 }
 0x53f   :  { %2127 = vmatmul.mubr.msk.f32.gmra.mxu0 %vm349_vm3, %v437_v46 }
 0x540   :  { %2133 = vmatprep.mubr.msk.bf16.mxu0 %vm2508_vm1, %v2507_v15 }
 0x5f3   :  { %v2119_v48 = vpop.f32.mrf.mxu0 }
 0x5f5   :  { %v552_v49 = vpop.f32.mrf.mxu0 }
 0x5f7   :  { %v2122_v51 = vpop.f32.mrf.mxu0 }
 0x5f9   :  { %v562_v52 = vpop.f32.mrf.mxu0 }
 0x5fa   :  { %v2272_v53 = vpack.i.bf16 %v2122_v51, %v562_v52  ;;  %v1888_v52 = vld [vmem:[#allocation7 + $0x5] ss:$0 sm:$0xff] }
 0x5fb   :  { %v2125_v54 = vpop.f32.mrf.mxu0 }
 0x5fc   :  { %2273 = vrot.lane.b32.xlu0 %v2272_v53, %s2505_s24 }
 0x5fd   :  { %v572_v56 = vpop.f32.mrf.mxu0 }
 0x5fe   :  { %v2277_v58 = vpack.i.bf16 %v2125_v54, %v572_v56 }
 0x5ff   :  { %v2128_v59 = vpop.f32.mrf.mxu0 }
 0x600   :  { %2278 = vrot.lane.b32.xlu1 %v2277_v58, %s2514_s20  ;;  %v1889_v58 = vld [vmem:[#allocation7 + $0x6] ss:$0 sm:$0xff] }
 0x601   :  { %v582_v61 = vpop.f32.mrf.mxu0 }
 0x602   :  { %v2282_v62 = vpack.i.bf16 %v2128_v59, %v582_v61 }
 0x604   :  { %2283 = vrot.lane.b32.xlu0 %v2282_v62, %s2515_s21 }
 0x66e   :  { %v2274_v63 = vpop.permute.xlu0 %2273 }
 0x66f   :  { %v2276_v1 = vunpack.i.h.bf16 %v2274_v63  ;;  %v2275_v2 = vunpack.i.l.bf16 %v2274_v63 }
 0x671   :  { %v616_v8 = vsel %vm211_vm2, %v2119_v48, %v2276_v1  ;;  %v615_v9 = vsel %vm211_vm2, %v552_v49, %v2275_v2  ;;  %v2309_v1 = vld [vmem:[%s3048_s3 + $0x10] sm:$0xff]   ;;  %v2310_v2 = vld [vmem:[%s3048_s3 + $0x8] sm:$0xff]  }
 0x672   :  { %v2279_v0 = vpop.permute.xlu1 %2278 }
 0x673   :  { %v2281_v5 = vunpack.i.h.bf16 %v2279_v0  ;;  %v2280_v6 = vunpack.i.l.bf16 %v2279_v0  ;;  %v2308_v0 = vld [vmem:[%s3048_s3 + $0x18] sm:$0xff]  }
 0x674   :  { %2146 = vmatpush3.bf16.msra.mxu1 %v2308_v0 }
 0x675   :  { %v619_v14 = vsel %vm617_vm4, %v616_v8, %v2281_v5  ;;  %v618_v16 = vsel %vm617_vm4, %v615_v9, %v2280_v6  ;;  %2147 = vmatprep.subr.bf16.mxu1 %v2507_v15  ;;  %v2311_v5 = vld [vmem:[%s3048_s3] sm:$0xff]   ;;  %v1890_v6 = vld [vmem:[#allocation7 + $0x7] ss:$0 sm:$0xff] }
 0x676   :  { %v2284_v7 = vpop.permute.xlu0 %2283 }
 0x677   :  { %v2286_v12 = vunpack.i.h.bf16 %v2284_v7  ;;  %v2285_v13 = vunpack.i.l.bf16 %v2284_v7 }
 0x678   :  { %2148 = vmatpush3.bf16.msra.mxu1 %v2309_v1 }
 0x679   :  { %v622_v17 = vsel %vm620_vm5, %v619_v14, %v2286_v12  ;;  %v621_v18 = vsel %vm620_vm5, %v618_v16, %v2285_v13  ;;  %2149 = vmatprep.subr.bf16.mxu1 %v2507_v15 }
 0x67a   :  { %v627_v20 = vpack.c.bf16 %v622_v17, %v621_v18 }
 0x67c   :  { %2134 = vmatmul.mubr.msk.bf16.vlgmr.msra.gmra.mxu0 %vm67_vm0, %v627_v20  ;;  %2150 = vmatpush3.bf16.msra.mxu1 %v2310_v2 }
 0x67d   :  { %2141 = vmatprep.mubr.msk.bf16.mxu0 %vm2508_vm1, %v2507_v15  ;;  %2151 = vmatprep.subr.bf16.mxu1 %v2507_v15 }
 0x680   :  { %2152 = vmatpush3.bf16.msra.mxu1 %v2311_v5 }
 0x73c   :  { %v682_v22 = vpop.f32.mrf.mxu0 }
 0x73d   :  { %v683_v23 = vadd.f32 %v1884_v21, %v682_v22 }
 0x73e   :  { %v2135_v24 = vpop.f32.mrf.mxu0 }
 0x73f   :  { %v689_v25 = vadd.f32 %v683_v23, %v2573_v31 }
 0x740   :  { %v685_v26 = vpop.f32.mrf.mxu0 }
 0x741   :  { %v686_v27 = vadd.f32 %v1884_v21, %v685_v26  ;;  %v693_v28 = vsel %vm67_vm0, %v689_v25, 0.0 }
 0x742   :  { %694 = vadd.xlane.f32.xlu1 %v693_v28  ;;  %v2136_v36 = vpop.f32.mrf.mxu0 }
 0x743   :  { %v690_v39 = vadd.f32 %v686_v27, %v2575_v32  ;;  %v2771_v32 = vld [vmem:[%s3047_s2 + $0x20] ss:$12 sps:$4 sm:$0xff]  }
 0x744   :  { %2138 = vmatpush3.bf16.msra.mxu0 %v2771_v32 }
 0x745   :  { %v696_v29 = vsel %vm67_vm0, %v690_v39, 0.0  ;;  %2139 = vmatprep.subr.bf16.mxu0 %v2507_v15 }
 0x746   :  { %697 = vadd.xlane.f32.xlu0 %v696_v29 }
 0x748   :  { %2140 = vmatpush3.bf16.msra.mxu0 %v2777_v43 }
 0x749   :  { %2157 = vmatprep.subr.bf16.mxu0 %v2507_v15 }
 0x7cb   :  { %v695_v30 = vpop.xlane.xlu1 %694 }
 0x7cc   :  { %v699_v33 = vmul.f32 0.03125, %v695_v30 }
 0x7ce   :  { %v701_v34 = vsub.f32 %v689_v25, %v699_v33 }
 0x7cf   :  { %v698_v35 = vpop.xlane.xlu0 %697 }
 0x7d0   :  { %v700_v37 = vmul.f32 0.03125, %v698_v35  ;;  %v703_v38 = vmul.f32 %v701_v34, %v701_v34 }
 0x7d2   :  { %v702_v40 = vsub.f32 %v690_v39, %v700_v37  ;;  %v705_v31 = vsel %vm67_vm0, %v703_v38, 0.0  ;;  %v1894_v37 = vld [vmem:[#allocation7 + $0x8] ss:$0 sm:$0xff] }
 0x7d3   :  { %706 = vadd.xlane.f32.xlu0 %v705_v31 }
 0x7d4   :  { %v704_v41 = vmul.f32 %v702_v40, %v702_v40 }
 0x7d6   :  { %v708_v42 = vsel %vm67_vm0, %v704_v41, 0.0 }
 0x7d7   :  { %709 = vadd.xlane.f32.xlu0 %v708_v42 }
 0x85c   :  { %v707_v44 = vpop.xlane.xlu0 %706 }
 0x85d   :  { %v711_v45 = vmul.f32 0.03125, %v707_v44 }
 0x85f   :  { %v713_v46 = vadd.f32 1e-12, %v711_v45 }
 0x860   :  { %v710_v47 = vpop.xlane.xlu0 %709 }
 0x861   :  { %2358 = vrsqrt.f32 %v713_v46  ;;  %v712_v48 = vmul.f32 0.03125, %v710_v47 }
 0x863   :  { %v714_v49 = vadd.f32 1e-12, %v712_v48 }
 0x865   :  { %2360 = vrsqrt.f32 %v714_v49 }
 0x86e   :  { %v2359_v50 = vpop.eup %2358 }
 0x86f   :  { %v717_v51 = vmul.f32 %v2359_v50, %v701_v34 }
 0x871   :  { %v723_v56 = vmul.f32 %v1888_v52, %v717_v51 }
 0x872   :  { %v2361_v53 = vpop.eup %2360 }
 0x873   :  { %v718_v54 = vmul.f32 %v2361_v53, %v702_v40  ;;  %v729_v61 = vadd.f32 %v1889_v58, %v723_v56 }
 0x875   :  { %v724_v59 = vmul.f32 %v1888_v52, %v718_v54 }
 0x877   :  { %v730_v62 = vadd.f32 %v1889_v58, %v724_v59 }
 0x879   :  { %v731_v63 = vpack.c.bf16 %v730_v62, %v729_v61 }
 0x87b   :  { %2142 = vmatmul.mubr.msk.bf16.vlgmr.msra.gmra.mxu0 %vm67_vm0, %v731_v63  ;;  %v2313_v63 = vld [vmem:[%s3047_s2 + $0x30] ss:$12 sps:$4 sm:$0xff]  }
 0x87c   :  { %2161 = vmatprep.mubr.msk.bf16.mxu0 %vm2508_vm1, %v2507_v15 }
 0x93b   :  { %v790_v7 = vpop.f32.mrf.mxu0 }
 0x93c   :  { %v791_v8 = vadd.f32 %v1890_v6, %v790_v7 }
 0x93d   :  { %v2143_v9 = vpop.f32.mrf.mxu0 }
 0x93e   :  { %v797_v12 = vmul.f32 %v791_v8, %v791_v8 }
 0x93f   :  { %v793_v13 = vpop.f32.mrf.mxu0 }
 0x940   :  { %v799_v14 = vmul.f32 %v797_v12, %v791_v8  ;;  %v794_v16 = vadd.f32 %v1890_v6, %v793_v13  ;;  %v1900_v12 = vld [vmem:[#allocation7 + $0x9] ss:$0 sm:$0xff] }
 0x941   :  { %v2144_v17 = vpop.f32.mrf.mxu0 }
 0x942   :  { %v801_v18 = vmul.f32 0.044715, %v799_v14  ;;  %v798_v20 = vmul.f32 %v794_v16, %v794_v16  ;;  %v1901_v17 = vld [vmem:[#allocation7 + $0xa] ss:$0 sm:$0xff] }
 0x944   :  { %v803_v21 = vadd.f32 %v801_v18, %v791_v8  ;;  %v800_v22 = vmul.f32 %v798_v20, %v794_v16 }
 0x946   :  { %v805_v23 = vmul.f32 0.7978846, %v803_v21  ;;  %v802_v24 = vmul.f32 0.044715, %v800_v22 }
 0x948   :  { %2362 = vtanh.f32 %v805_v23  ;;  %v804_v25 = vadd.f32 %v802_v24, %v794_v16  ;;  %v1906_v23 = vld [vmem:[#allocation7 + $0xb] ss:$0 sm:$0xff] }
 0x94a   :  { %v806_v26 = vmul.f32 0.7978846, %v804_v25 }
 0x94c   :  { %2364 = vtanh.f32 %v806_v26 }
 0x955   :  { %v2363_v27 = vpop.eup %2362 }
 0x956   :  { %v809_v28 = vadd.f32 1.0, %v2363_v27 }
 0x958   :  { %v811_v39 = vmul.f32 0.5, %v809_v28 }
 0x959   :  { %v2365_v36 = vpop.eup %2364 }
 0x95a   :  { %v810_v29 = vadd.f32 1.0, %v2365_v36  ;;  %v813_v33 = vmul.f32 %v811_v39, %v791_v8 }
 0x95c   :  { %v812_v30 = vmul.f32 0.5, %v810_v29 }
 0x95e   :  { %v814_v34 = vmul.f32 %v812_v30, %v794_v16 }
 0x960   :  { %v815_v35 = vpack.c.bf16 %v814_v34, %v813_v33 }
 0x962   :  { %2154 = vmatmul.mubr.msk.bf16.vlgmr.msra.gmra.mxu1 %vm349_vm3, %v815_v35 }
 0xa22   :  { %v890_v38 = vpop.f32.mrf.mxu1 }
 0xa23   :  { %v891_v40 = vadd.f32 %v1894_v37, %v890_v38 }
 0xa24   :  { %v2155_v31 = vpop.f32.mrf.mxu1 }
 0xa25   :  { %v897_v41 = vadd.f32 %v891_v40, %v729_v61 }
 0xa26   :  { %v893_v42 = vpop.f32.mrf.mxu1 }
 0xa27   :  { %v894_v44 = vadd.f32 %v1894_v37, %v893_v42  ;;  %v901_v45 = vsel %vm67_vm0, %v897_v41, 0.0 }
 0xa28   :  { %902 = vadd.xlane.f32.xlu1 %v901_v45  ;;  %v2156_v46 = vpop.f32.mrf.mxu1 }
 0xa29   :  { %v898_v47 = vadd.f32 %v894_v44, %v730_v62  ;;  %v2312_v62 = vld [vmem:[%s3047_s2 + $0x48] ss:$12 sps:$4 sm:$0xff]  }
 0xa2a   :  { %2158 = vmatpush3.bf16.msra.mxu0 %v2312_v62 }
 0xa2b   :  { %v904_v48 = vsel %vm67_vm0, %v898_v47, 0.0  ;;  %2159 = vmatprep.subr.bf16.mxu0 %v2507_v15 }
 0xa2c   :  { %905 = vadd.xlane.f32.xlu0 %v904_v48 }
 0xa2e   :  { %2160 = vmatpush3.bf16.msra.mxu0 %v2313_v63 }
 0xab1   :  { %v903_v49 = vpop.xlane.xlu1 %902 }
 0xab2   :  { %v907_v50 = vmul.f32 0.03125, %v903_v49 }
 0xab4   :  { %v909_v51 = vsub.f32 %v897_v41, %v907_v50 }
 0xab5   :  { %v906_v52 = vpop.xlane.xlu0 %905 }
 0xab6   :  { %v908_v53 = vmul.f32 0.03125, %v906_v52  ;;  %v911_v54 = vmul.f32 %v909_v51, %v909_v51 }
 0xab8   :  { %v910_v56 = vsub.f32 %v898_v47, %v908_v53  ;;  %v913_v58 = vsel %vm67_vm0, %v911_v54, 0.0 }
 0xab9   :  { %914 = vadd.xlane.f32.xlu1 %v913_v58 }
 0xaba   :  { %v912_v59 = vmul.f32 %v910_v56, %v910_v56 }
 0xabc   :  { %v916_v61 = vsel %vm67_vm0, %v912_v59, 0.0 }
 0xabd   :  { %917 = vadd.xlane.f32.xlu0 %v916_v61 }
 0xb42   :  { %v915_v0 = vpop.xlane.xlu1 %914 }
 0xb43   :  { %v919_v1 = vmul.f32 0.03125, %v915_v0 }
 0xb45   :  { %v921_v2 = vadd.f32 1e-12, %v919_v1 }
 0xb46   :  { %v918_v5 = vpop.xlane.xlu0 %917 }
 0xb47   :  { %2366 = vrsqrt.f32 %v921_v2  ;;  %v920_v6 = vmul.f32 0.03125, %v918_v5 }
 0xb49   :  { %v922_v7 = vadd.f32 1e-12, %v920_v6 }
 0xb4b   :  { %2368 = vrsqrt.f32 %v922_v7 }
 0xb54   :  { %v2367_v8 = vpop.eup %2366 }
 0xb55   :  { %v925_v9 = vmul.f32 %v2367_v8, %v909_v51 }
 0xb57   :  { %v931_v16 = vmul.f32 %v1900_v12, %v925_v9 }
 0xb58   :  { %v2369_v13 = vpop.eup %2368 }
 0xb59   :  { %v926_v14 = vmul.f32 %v2369_v13, %v910_v56  ;;  %v2812_v20 = vadd.f32 %v1901_v17, %v931_v16 }
 0xb5b   :  { %v932_v18 = vmul.f32 %v1900_v12, %v926_v14 }
 0xb5d   :  { %v2814_v21 = vadd.f32 %v1901_v17, %v932_v18 }
 0xb5f   :  { %v939_v22 = vpack.c.bf16 %v2814_v21, %v2812_v20 }
 0xb61   :  { %2162 = vmatmul.mubr.msk.bf16.vlgmr.msra.gmra.mxu0 %vm67_vm0, %v939_v22 }
 0xc21   :  { %v999_v24 = vpop.f32.mrf.mxu0 }
 0xc22   :  { %v2819_v25 = vadd.f32 %v1906_v23, %v999_v24 }
 0xc23   :  { %v2163_v26 = vpop.f32.mrf.mxu0 }
 0xc24   :  { %1016 = vrot.lane.b32.xlu0 %v2819_v25, %s2509_s11  ;;  %2181 = vmatprep.mubr.msk.f32.mxu1 %vm211_vm2, %v2819_v25 }
 0xc25   :  { %v1002_v27 = vpop.f32.mrf.mxu0 }
 0xc26   :  { %v2825_v28 = vadd.f32 %v1906_v23, %v1002_v27 }
 0xc27   :  { %v2164_v36 = vpop.f32.mrf.mxu0 }
 0xc28   :  { %1008 = vrot.lane.b32.xlu0 %v2819_v25, %s2511_s13  ;;  %1018 = vrot.lane.b32.xlu1 %v2825_v28, %s2509_s11 }
 0xc2c   :  { %1014 = vrot.lane.b32.xlu1 %v2825_v28, %s2510_s12 }
 0xc30   :  { %1012 = vrot.lane.b32.xlu1 %v2819_v25, %s2510_s12 }
 0xc34   :  { %1010 = vrot.lane.b32.xlu1 %v2825_v28, %s2511_s13 }
 0xc96   :  { %v2837_v39 = vpop.permute.xlu0 %1016 }
 0xc97   :  { %1032 = vrot.lane.b32.xlu0 %v2837_v39, %s2512_s14 }
 0xc9a   :  { %v2841_v29 = vpop.permute.xlu1 %1018  ;;  %v2853_v34 = vpop.permute.xlu0 %1008 }
 0xc9b   :  { %1034 = vrot.lane.b32.xlu1 %v2841_v29, %s2512_s14 }
 0xc9e   :  { %v2845_v30 = vpop.permute.xlu1 %1014 }
 0xc9f   :  { %1030 = vrot.lane.b32.xlu1 %v2845_v30, %s2512_s14 }
 0xca2   :  { %v2849_v33 = vpop.permute.xlu1 %1012 }
 0xca3   :  { %1028 = vrot.lane.b32.xlu0 %v2849_v33, %s2512_s14 }
 0xca6   :  { %v2855_v35 = vpop.permute.xlu1 %1010 }
 0xca7   :  { %1024 = vrot.lane.b32.xlu0 %v2853_v34, %s2512_s14  ;;  %1026 = vrot.lane.b32.xlu1 %v2855_v35, %s2512_s14 }
 0xcab   :  { %1020 = vrot.lane.b32.xlu0 %v2819_v25, %s2512_s14  ;;  %1022 = vrot.lane.b32.xlu1 %v2825_v28, %s2512_s14 }
 0xd09   :  { %v1033_v38 = vpop.permute.xlu0 %1032 }
 0xd0d   :  { %v1035_v37 = vpop.permute.xlu1 %1034 }
 0xd0e   :  { %2165 = vmatprep.subr.msk.mxu1 %vm211_vm2, %v1035_v37 }
 0xd0f   :  { %2166 = vmatpush3.xpose.msk.msra.mxu1 %vm211_vm2, %v1035_v37 }
 0xd10   :  { %2167 = vmatprep.subr.msk.mxu1 %vm211_vm2, %v1033_v38 }
 0xd11   :  { %v1031_v40 = vpop.permute.xlu1 %1030 }
 0xd13   :  { %2168 = vmatpush3.xpose.msk.msra.mxu1 %vm211_vm2, %v1033_v38 }
 0xd14   :  { %2169 = vmatprep.subr.msk.mxu1 %vm211_vm2, %v1031_v40 }
 0xd15   :  { %v1029_v31 = vpop.permute.xlu0 %1028 }
 0xd17   :  { %2170 = vmatpush3.xpose.msk.msra.mxu1 %vm211_vm2, %v1031_v40 }
 0xd18   :  { %2171 = vmatprep.subr.msk.mxu1 %vm211_vm2, %v1029_v31 }
 0xd19   :  { %v1027_v41 = vpop.permute.xlu1 %1026  ;;  %v1025_v42 = vpop.permute.xlu0 %1024 }
 0xd1b   :  { %2172 = vmatpush3.xpose.msk.msra.mxu1 %vm211_vm2, %v1029_v31 }
 0xd1c   :  { %2173 = vmatprep.subr.msk.mxu1 %vm211_vm2, %v1027_v41 }
 0xd1d   :  { %v1023_v44 = vpop.permute.xlu1 %1022  ;;  %v1021_v45 = vpop.permute.xlu0 %1020 }
 0xd1f   :  { %2174 = vmatpush3.xpose.msk.msra.mxu1 %vm211_vm2, %v1027_v41 }
 0xd20   :  { %2175 = vmatprep.subr.msk.mxu1 %vm211_vm2, %v1025_v42 }
 0xd23   :  { %2176 = vmatpush3.xpose.msk.msra.mxu1 %vm211_vm2, %v1025_v42 }
 0xd24   :  { %2177 = vmatprep.subr.msk.mxu1 %vm211_vm2, %v1023_v44 }
 0xd27   :  { %2178 = vmatpush3.xpose.msk.msra.mxu1 %vm211_vm2, %v1023_v44 }
 0xd28   :  { %2179 = vmatprep.subr.msk.mxu1 %vm211_vm2, %v1021_v45 }
 0xd2b   :  { %2180 = vmatpush3.xpose.msk.msra.mxu1 %vm211_vm2, %v1021_v45 }
 0xd2c   :  { %2237 = vmatprep.subr.bf16.mxu1 %v2507_v15 }
 0xd2e   :  { %2182 = vmatmul.mubr.msk.f32.vlgmr.msra.gmra.mxu1 %vm211_vm2, %v2825_v28 }
 0xd2f   :  { %2184 = vmatprep.mubr.msk.f32.mxu1 %vm211_vm2, %v2853_v34 }
 0xd32   :  { %2185 = vmatmul.mubr.msk.f32.gmra.mxu1 %vm211_vm2, %v2855_v35 }
 0xd33   :  { %2187 = vmatprep.mubr.msk.f32.mxu1 %vm211_vm2, %v2849_v33 }
 0xd36   :  { %2188 = vmatmul.mubr.msk.f32.gmra.mxu1 %vm211_vm2, %v2845_v30 }
 0xd37   :  { %2190 = vmatprep.mubr.msk.f32.mxu1 %vm211_vm2, %v2837_v39 }
 0xd3a   :  { %2191 = vmatmul.mubr.msk.f32.gmra.mxu1 %vm211_vm2, %v2841_v29 }
 0xd3b   :  { %2245 = vmatprep.mubr.msk.bf16.mxu1 %vm2508_vm1, %v2507_v15 }
 0xdee   :  { %v2183_v46 = vpop.f32.mrf.mxu1 }
 0xdef   :  { %v1140_v47 = vadd.f32 %v2183_v46, %v2659_v55 }
 0xdf0   :  { %v1134_v48 = vpop.f32.mrf.mxu1 }
 0xdf1   :  { %v1135_v49 = vadd.f32 %v1134_v48, %v2661_v57  ;;  %v1176_v50 = vsel %vm349_vm3, %v1140_v47, -inf }
 0xdf2   :  { %1177 = vmax.xlane.f32.xlu0 %v1176_v50  ;;  %v2186_v51 = vpop.f32.mrf.mxu1 }
 0xdf3   :  { %v1173_v52 = vsel %vm349_vm3, %v1135_v49, -inf  ;;  %v1150_v58 = vadd.f32 %v2186_v51, %v2664_v60 }
 0xdf4   :  { %v1144_v53 = vpop.f32.mrf.mxu1  ;;  %1174 = vmax.xlane.f32.xlu1 %v1173_v52 }
 0xdf5   :  { %v1145_v54 = vadd.f32 %v1144_v53, %v2670_v3  ;;  %v1182_v62 = vsel %vm349_vm3, %v1150_v58, -inf }
 0xdf6   :  { %v2189_v56 = vpop.f32.mrf.mxu1 }
 0xdf7   :  { %v1179_v59 = vsel %vm349_vm3, %v1145_v54, -inf  ;;  %v1160_v57 = vadd.f32 %v2189_v56, %v2672_v4 }
 0xdf8   :  { %v1154_v61 = vpop.f32.mrf.mxu1  ;;  %1180 = vmax.xlane.f32.xlu0 %v1179_v59 }
 0xdf9   :  { %v1155_v55 = vadd.f32 %v1154_v61, %v2677_v10  ;;  %v1188_v1 = vsel %vm349_vm3, %v1160_v57, -inf }
 0xdfa   :  { %v2192_v0 = vpop.f32.mrf.mxu1 }
 0xdfb   :  { %v1185_v63 = vsel %vm349_vm3, %v1155_v55, -inf  ;;  %v1170_v3 = vadd.f32 %v2192_v0, %v2679_v11 }
 0xdfc   :  { %1183 = vmax.xlane.f32.xlu0 %v1182_v62  ;;  %1186 = vmax.xlane.f32.xlu1 %v1185_v63  ;;  %v1164_v4 = vpop.f32.mrf.mxu1 }
 0xdfd   :  { %v1194_v60 = vsel %vm349_vm3, %v1170_v3, -inf  ;;  %v2921_v10 = vadd.f32 %v1164_v4, %v2685_v19 }
 0xdff   :  { %v1191_v11 = vsel %vm349_vm3, %v2921_v10, -inf }
 0xe00   :  { %1189 = vmax.xlane.f32.xlu0 %v1188_v1 }
 0xe04   :  { %1195 = vmax.xlane.f32.xlu0 %v1194_v60 }
 0xe0d   :  { %1275 = vrot.lane.b32.xlu1 %v2841_v29, %s2513_s15 }
 0xe11   :  { %1271 = vrot.lane.b32.xlu1 %v2845_v30, %s2513_s15 }
 0xe1a   :  { %1273 = vrot.lane.b32.xlu0 %v2837_v39, %s2513_s15 }
 0xe1e   :  { %1265 = vrot.lane.b32.xlu0 %v2853_v34, %s2513_s15 }
 0xe35   :  { %1192 = vmax.xlane.f32.xlu1 %v1191_v11 }
 0xe46   :  { %1269 = vrot.lane.b32.xlu1 %v2849_v33, %s2513_s15 }
 0xe4a   :  { %1267 = vrot.lane.b32.xlu1 %v2855_v35, %s2513_s15 }
 0xe7b   :  { %v1178_v2 = vpop.xlane.xlu0 %1177 }
 0xe7c   :  { %v1198_v5 = vsub.f32 %v1140_v47, %v1178_v2 }
 0xe7d   :  { %v1175_v6 = vpop.xlane.xlu1 %1174 }
 0xe7e   :  { %v1207_v7 = vmul.f32 1.442695, %v1198_v5  ;;  %v1197_v8 = vsub.f32 %v1135_v49, %v1175_v6 }
 0xe80   :  { %2370 = vpow2.f32 %v1207_v7  ;;  %v1205_v9 = vmul.f32 1.442695, %v1197_v8 }
 0xe81   :  { %v1181_v12 = vpop.xlane.xlu0 %1180 }
 0xe82   :  { %2372 = vpow2.f32 %v1205_v9  ;;  %v1199_v19 = vsub.f32 %v1145_v54, %v1181_v12 }
 0xe84   :  { %v1209_v13 = vmul.f32 1.442695, %v1199_v19 }
 0xe85   :  { %v1184_v14 = vpop.xlane.xlu0 %1183  ;;  %v1187_v16 = vpop.xlane.xlu1 %1186 }
 0xe86   :  { %2374 = vpow2.f32 %v1209_v13  ;;  %v1200_v17 = vsub.f32 %v1150_v58, %v1184_v14  ;;  %v1201_v18 = vsub.f32 %v1155_v55, %v1187_v16 }
 0xe88   :  { %v1211_v22 = vmul.f32 1.442695, %v1200_v17  ;;  %v1213_v23 = vmul.f32 1.442695, %v1201_v18 }
 0xe89   :  { %v1190_v24 = vpop.xlane.xlu0 %1189  ;;  %v1276_v26 = vpop.permute.xlu1 %1275 }
 0xe8a   :  { %2376 = vpow2.f32 %v1211_v22  ;;  %v1202_v27 = vsub.f32 %v1160_v57, %v1190_v24  ;;  %2193 = vmatprep.subr.mxu0 %v1276_v26  ;;  %v2314_v22 = vld [vmem:[%s3047_s2 + $0x4c] ss:$12 sps:$4 sm:$0xff]  }
 0xe8b   :  { %2378 = vpow2.f32 %v1213_v23  ;;  %2194 = vmatpush3.msra.mxu0 %v1276_v26  ;;  %v2315_v26 = vld [vmem:[%s3047_s2 + $0x34] ss:$12 sps:$4 sm:$0xff]  }
 0xe8c   :  { %v1215_v36 = vmul.f32 1.442695, %v1202_v27 }
 0xe8d   :  { %v2929_v39 = vpop.eup %2370  ;;  %v1196_v29 = vpop.xlane.xlu0 %1195 }
 0xe8e   :  { %2380 = vpow2.f32 %v1215_v36  ;;  %v1204_v30 = vsub.f32 %v1170_v3, %v1196_v29  ;;  %v1224_v33 = vsel %vm349_vm3, %v2929_v39, 0.0  ;;  %v1272_v31 = vpop.permute.xlu1 %1271 }
 0xe8f   :  { %v2373_v34 = vpop.eup %2372  ;;  %1225 = vadd.xlane.f32.xlu0 %v1224_v33 }
 0xe90   :  { %v1219_v35 = vmul.f32 1.442695, %v1204_v30  ;;  %v1221_v37 = vsel %vm349_vm3, %v2373_v34, 0.0 }
 0xe91   :  { %v1274_v38 = vpop.permute.xlu0 %1273  ;;  %1222 = vadd.xlane.f32.xlu1 %v1221_v37 }
 0xe92   :  { %2382 = vpow2.f32 %v1219_v35  ;;  %2195 = vmatprep.subr.mxu0 %v1274_v38 }
 0xe93   :  { %v2934_v40 = vpop.eup %2374  ;;  %2196 = vmatpush3.msra.mxu0 %v1274_v38 }
 0xe94   :  { %2197 = vmatprep.subr.mxu0 %v1272_v31  ;;  %v1227_v41 = vsel %vm349_vm3, %v2934_v40, 0.0 }
 0xe95   :  { %1228 = vadd.xlane.f32.xlu1 %v1227_v41  ;;  %2198 = vmatpush3.msra.mxu0 %v1272_v31  ;;  %v1266_v58 = vpop.permute.xlu0 %1265 }
 0xe97   :  { %v2938_v42 = vpop.eup %2376 }
 0xe98   :  { %v2940_v44 = vpop.eup %2378  ;;  %v1230_v45 = vsel %vm349_vm3, %v2938_v42, 0.0 }
 0xe99   :  { %1231 = vadd.xlane.f32.xlu0 %v1230_v45  ;;  %v1233_v46 = vsel %vm349_vm3, %v2940_v44, 0.0 }
 0xe9a   :  { %1234 = vadd.xlane.f32.xlu1 %v1233_v46 }
 0xe9b   :  { %v2946_v47 = vpop.eup %2380 }
 0xe9c   :  { %v1236_v48 = vsel %vm349_vm3, %v2946_v47, 0.0 }
 0xe9d   :  { %1237 = vadd.xlane.f32.xlu0 %v1236_v48 }
 0xe9f   :  { %v2950_v49 = vpop.eup %2382 }
 0xea0   :  { %v1242_v50 = vsel %vm349_vm3, %v2950_v49, 0.0 }
 0xea1   :  { %1243 = vadd.xlane.f32.xlu0 %v1242_v50 }
 0xeb7   :  { %1261 = vrot.lane.b32.xlu0 %v2819_v25, %s2513_s15 }
 0xebe   :  { %v1193_v51 = vpop.xlane.xlu1 %1192 }
 0xebf   :  { %v1203_v52 = vsub.f32 %v2921_v10, %v1193_v51 }
 0xec1   :  { %v1217_v53 = vmul.f32 1.442695, %v1203_v52 }
 0xec2   :  { %v1270_v54 = vpop.permute.xlu1 %1269 }
 0xec3   :  { %2384 = vpow2.f32 %v1217_v53  ;;  %2199 = vmatprep.subr.mxu0 %v1270_v54 }
 0xec4   :  { %2200 = vmatpush3.msra.mxu0 %v1270_v54 }
 0xec6   :  { %v1268_v56 = vpop.permute.xlu1 %1267 }
 0xec7   :  { %2201 = vmatprep.subr.mxu0 %v1268_v56 }
 0xec8   :  { %2202 = vmatpush3.msra.mxu0 %v1268_v56  ;;  %v1938_v56 = vld [vmem:[#allocation7 + $0xc] ss:$0 sm:$0xff] }
 0xec9   :  { %2203 = vmatprep.subr.mxu0 %v1266_v58 }
 0xeca   :  { %2204 = vmatpush3.msra.mxu0 %v1266_v58 }
 0xed0   :  { %v2385_v59 = vpop.eup %2384 }
 0xed1   :  { %v1239_v61 = vsel %vm349_vm3, %v2385_v59, 0.0 }
 0xed2   :  { %1240 = vadd.xlane.f32.xlu1 %v1239_v61 }
 0xee3   :  { %1263 = vrot.lane.b32.xlu1 %v2825_v28, %s2513_s15 }
 0xf18   :  { %v1226_v62 = vpop.xlane.xlu0 %1225 }
 0xf1a   :  { %v1223_v25 = vpop.xlane.xlu1 %1222 }
 0xf1b   :  { %2386 = vrcp.f32 %v1223_v25 }
 0xf1c   :  { %2388 = vrcp.f32 %v1226_v62 }
 0xf1e   :  { %v1229_v63 = vpop.xlane.xlu1 %1228 }
 0xf1f   :  { %2390 = vrcp.f32 %v1229_v63 }
 0xf22   :  { %v1232_v0 = vpop.xlane.xlu0 %1231 }
 0xf23   :  { %v1235_v3 = vpop.xlane.xlu1 %1234  ;;  %2392 = vrcp.f32 %v1232_v0 }
 0xf24   :  { %2394 = vrcp.f32 %v1235_v3 }
 0xf26   :  { %v1238_v1 = vpop.xlane.xlu0 %1237 }
 0xf27   :  { %2396 = vrcp.f32 %v1238_v1 }
 0xf28   :  { %v2387_v55 = vpop.eup %2386 }
 0xf29   :  { %v1246_v57 = vmul.f32 %v2387_v55, %v2373_v34  ;;  %v2389_v28 = vpop.eup %2388 }
 0xf2a   :  { %v1244_v60 = vpop.xlane.xlu0 %1243  ;;  %v1248_v5 = vmul.f32 %v2389_v28, %v2929_v39 }
 0xf2b   :  { %2209 = vmatprep.mubr.msk.f32.mxu0 %vm349_vm3, %v1246_v57 }
 0xf2c   :  { %v2391_v11 = vpop.eup %2390 }
 0xf2d   :  { %v1250_v7 = vmul.f32 %v2391_v11, %v2934_v40 }
 0xf2e   :  { %v1262_v2 = vpop.permute.xlu0 %1261 }
 0xf30   :  { %v2393_v6 = vpop.eup %2392 }
 0xf31   :  { %v2395_v8 = vpop.eup %2394  ;;  %v1252_v9 = vmul.f32 %v2393_v6, %v2938_v42 }
 0xf32   :  { %v1254_v19 = vmul.f32 %v2395_v8, %v2940_v44 }
 0xf34   :  { %v2397_v12 = vpop.eup %2396 }
 0xf35   :  { %v1256_v14 = vmul.f32 %v2397_v12, %v2946_v47 }
 0xf5b   :  { %v1241_v4 = vpop.xlane.xlu1 %1240 }
 0xf5c   :  { %2398 = vrcp.f32 %v1241_v4 }
 0xf5d   :  { %2400 = vrcp.f32 %v1244_v60 }
 0xf5f   :  { %v1264_v10 = vpop.permute.xlu1 %1263 }
 0xf60   :  { %2205 = vmatprep.subr.mxu0 %v1264_v10 }
 0xf61   :  { %2206 = vmatpush3.msra.mxu0 %v1264_v10 }
 0xf62   :  { %2207 = vmatprep.subr.mxu0 %v1262_v2 }
 0xf63   :  { %2208 = vmatpush3.msra.mxu0 %v1262_v2 }
 0xf64   :  { %2210 = vmatmul.mubr.msk.f32.vlgmr.msra.gmra.mxu0 %vm349_vm3, %v1248_v5  ;;  %2221 = vmatprep.subr.bf16.mxu0 %v2507_v15 }
 0xf65   :  { %2212 = vmatprep.mubr.msk.f32.mxu0 %vm349_vm3, %v1250_v7  ;;  %2222 = vmatpush3.bf16.msra.mxu0 %v2314_v22  ;;  %v2317_v7 = vld [vmem:[%s3047_s2 + $0x38] ss:$12 sps:$4 sm:$0xff]  }
 0xf66   :  { %2223 = vmatprep.subr.bf16.mxu0 %v2507_v15 }
 0xf68   :  { %2213 = vmatmul.mubr.msk.f32.gmra.mxu0 %vm349_vm3, %v1252_v9 }
 0xf69   :  { %v2399_v13 = vpop.eup %2398  ;;  %2215 = vmatprep.mubr.msk.f32.mxu0 %vm349_vm3, %v1254_v19  ;;  %2224 = vmatpush3.bf16.msra.mxu0 %v2315_v26  ;;  %v1943_v26 = vld [vmem:[#allocation7 + $0xe] ss:$0 sm:$0xff] }
 0xf6a   :  { %v1258_v16 = vmul.f32 %v2399_v13, %v2385_v59  ;;  %v2401_v17 = vpop.eup %2400  ;;  %2229 = vmatprep.subr.bf16.mxu0 %v2507_v15 }
 0xf6b   :  { %v1260_v18 = vmul.f32 %v2401_v17, %v2950_v49 }
 0xf6c   :  { %2216 = vmatmul.mubr.msk.f32.gmra.mxu0 %vm349_vm3, %v1256_v14 }
 0xf6d   :  { %2218 = vmatprep.mubr.msk.f32.mxu0 %vm349_vm3, %v1258_v16 }
 0xf70   :  { %2219 = vmatmul.mubr.msk.f32.gmra.mxu0 %vm349_vm3, %v1260_v18  ;;  %v1942_v18 = vld [vmem:[#allocation7 + $0xd] ss:$0 sm:$0xff] }
 0xf71   :  { %2225 = vmatprep.mubr.msk.bf16.mxu0 %vm2508_vm1, %v2507_v15 }
0x1024   :  { %v2211_v23 = vpop.f32.mrf.mxu0 }
0x1026   :  { %v1375_v24 = vpop.f32.mrf.mxu0 }
0x1028   :  { %v2214_v27 = vpop.f32.mrf.mxu0 }
0x102a   :  { %v1385_v36 = vpop.f32.mrf.mxu0 }
0x102b   :  { %v2287_v39 = vpack.i.bf16 %v2214_v27, %v1385_v36 }
0x102c   :  { %v2217_v29 = vpop.f32.mrf.mxu0 }
0x102d   :  { %2288 = vrot.lane.b32.xlu1 %v2287_v39, %s2505_s24 }
0x102e   :  { %v1395_v30 = vpop.f32.mrf.mxu0 }
0x102f   :  { %v2292_v33 = vpack.i.bf16 %v2217_v29, %v1395_v30  ;;  %v2318_v30 = vld [vmem:[%s3048_s3 + $0x38] sm:$0xff]  }
0x1030   :  { %v2220_v34 = vpop.f32.mrf.mxu0  ;;  %2238 = vmatpush3.bf16.msra.mxu1 %v2318_v30  ;;  %v1967_v30 = vld [vmem:[#allocation7 + $0x12] ss:$0 sm:$0xff] }
0x1031   :  { %2293 = vrot.lane.b32.xlu0 %v2292_v33, %s2514_s20  ;;  %2239 = vmatprep.subr.bf16.mxu1 %v2507_v15  ;;  %v2319_v33 = vld [vmem:[%s3048_s3 + $0x30] sm:$0xff]  }
0x1032   :  { %v1405_v35 = vpop.f32.mrf.mxu0 }
0x1033   :  { %v2297_v37 = vpack.i.bf16 %v2220_v34, %v1405_v35  ;;  %v2320_v34 = vld [vmem:[%s3048_s3 + $0x28] sm:$0xff]   ;;  %v2321_v35 = vld [vmem:[%s3048_s3 + $0x20] sm:$0xff]   ;;  %s2516_s3 = smov [#allocation8]  }
0x1034   :  { %2240 = vmatpush3.bf16.msra.mxu1 %v2319_v33 }
0x1035   :  { %2298 = vrot.lane.b32.xlu1 %v2297_v37, %s2515_s21  ;;  %2241 = vmatprep.subr.bf16.mxu1 %v2507_v15  ;;  %v1948_v37 = vld [vmem:[#allocation7 + $0xf] ss:$0 sm:$0xff] }
0x1038   :  { %2242 = vmatpush3.bf16.msra.mxu1 %v2320_v34 }
0x1039   :  { %2243 = vmatprep.subr.bf16.mxu1 %v2507_v15 }
0x103c   :  { %2244 = vmatpush3.bf16.msra.mxu1 %v2321_v35 }
0x109f   :  { %v2289_v38 = vpop.permute.xlu1 %2288 }
0x10a0   :  { %v2291_v31 = vunpack.i.h.bf16 %v2289_v38  ;;  %v2290_v41 = vunpack.i.l.bf16 %v2289_v38 }
0x10a2   :  { %v1439_v46 = vsel %vm211_vm2, %v2211_v23, %v2291_v31  ;;  %v1438_v47 = vsel %vm211_vm2, %v1375_v24, %v2290_v41 }
0x10a3   :  { %v2294_v40 = vpop.permute.xlu0 %2293 }
0x10a4   :  { %v2296_v42 = vunpack.i.h.bf16 %v2294_v40  ;;  %v2295_v44 = vunpack.i.l.bf16 %v2294_v40 }
0x10a6   :  { %v1441_v50 = vsel %vm617_vm4, %v1439_v46, %v2296_v42  ;;  %v1440_v51 = vsel %vm617_vm4, %v1438_v47, %v2295_v44 }
0x10a7   :  { %v2299_v45 = vpop.permute.xlu1 %2298 }
0x10a8   :  { %v2301_v48 = vunpack.i.h.bf16 %v2299_v45  ;;  %v2300_v49 = vunpack.i.l.bf16 %v2299_v45 }
0x10aa   :  { %v1443_v52 = vsel %vm620_vm5, %v1441_v50, %v2301_v48  ;;  %v1442_v53 = vsel %vm620_vm5, %v1440_v51, %v2300_v49 }
0x10ab   :  { %v1448_v54 = vpack.c.bf16 %v1443_v52, %v1442_v53 }
0x10ad   :  { %2226 = vmatmul.mubr.msk.bf16.vlgmr.msra.gmra.mxu0 %vm67_vm0, %v1448_v54 }
0x10ae   :  { %2233 = vmatprep.mubr.msk.bf16.mxu0 %vm2508_vm1, %v2507_v15 }
0x116d   :  { %v1503_v58 = vpop.f32.mrf.mxu0 }
0x116e   :  { %v1504_v59 = vadd.f32 %v1938_v56, %v1503_v58 }
0x116f   :  { %v2227_v61 = vpop.f32.mrf.mxu0 }
0x1170   :  { %v1510_v25 = vadd.f32 %v1504_v59, %v2812_v20 }
0x1171   :  { %v1506_v55 = vpop.f32.mrf.mxu0 }
0x1172   :  { %v1507_v57 = vadd.f32 %v1938_v56, %v1506_v55  ;;  %v1514_v62 = vsel %vm67_vm0, %v1510_v25, 0.0 }
0x1173   :  { %1515 = vadd.xlane.f32.xlu0 %v1514_v62  ;;  %v2228_v63 = vpop.f32.mrf.mxu0 }
0x1174   :  { %v1511_v0 = vadd.f32 %v1507_v57, %v2814_v21  ;;  %v2316_v21 = vld [vmem:[%s3047_s2 + $0x50] ss:$12 sps:$4 sm:$0xff]  }
0x1175   :  { %2230 = vmatpush3.bf16.msra.mxu0 %v2316_v21 }
0x1176   :  { %v1517_v3 = vsel %vm67_vm0, %v1511_v0, 0.0  ;;  %2231 = vmatprep.subr.bf16.mxu0 %v2507_v15 }
0x1177   :  { %1518 = vadd.xlane.f32.xlu1 %v1517_v3 }
0x1179   :  { %2232 = vmatpush3.bf16.msra.mxu0 %v2317_v7 }
0x117a   :  { %2249 = vmatprep.subr.bf16.mxu0 %v2507_v15 }
0x11fc   :  { %v1516_v1 = vpop.xlane.xlu0 %1515 }
0x11fd   :  { %v1520_v60 = vmul.f32 0.03125, %v1516_v1 }
0x11ff   :  { %v1522_v4 = vsub.f32 %v1510_v25, %v1520_v60 }
0x1200   :  { %v1519_v28 = vpop.xlane.xlu1 %1518 }
0x1201   :  { %v1521_v10 = vmul.f32 0.03125, %v1519_v28  ;;  %v1524_v11 = vmul.f32 %v1522_v4, %v1522_v4 }
0x1203   :  { %v1523_v2 = vsub.f32 %v1511_v0, %v1521_v10  ;;  %v1526_v20 = vsel %vm67_vm0, %v1524_v11, 0.0  ;;  %v1960_v0 = vld [vmem:[#allocation7 + $0x10] ss:$0 sm:$0xff] }
0x1204   :  { %1527 = vadd.xlane.f32.xlu0 %v1526_v20 }
0x1205   :  { %v1525_v5 = vmul.f32 %v1523_v2, %v1523_v2 }
0x1207   :  { %v1529_v6 = vsel %vm67_vm0, %v1525_v5, 0.0 }
0x1208   :  { %1530 = vadd.xlane.f32.xlu0 %v1529_v6 }
0x128d   :  { %v1528_v8 = vpop.xlane.xlu0 %1527 }
0x128e   :  { %v1532_v9 = vmul.f32 0.03125, %v1528_v8 }
0x1290   :  { %v1534_v12 = vadd.f32 1e-12, %v1532_v9 }
0x1291   :  { %v1531_v19 = vpop.xlane.xlu0 %1530 }
0x1292   :  { %2402 = vrsqrt.f32 %v1534_v12  ;;  %v1533_v13 = vmul.f32 0.03125, %v1531_v19 }
0x1294   :  { %v1535_v14 = vadd.f32 1e-12, %v1533_v13 }
0x1296   :  { %2404 = vrsqrt.f32 %v1535_v14 }
0x129f   :  { %v2403_v16 = vpop.eup %2402 }
0x12a0   :  { %v1538_v17 = vmul.f32 %v2403_v16, %v1522_v4 }
0x12a2   :  { %v1544_v24 = vmul.f32 %v1942_v18, %v1538_v17 }
0x12a3   :  { %v2405_v22 = vpop.eup %2404 }
0x12a4   :  { %v1539_v23 = vmul.f32 %v2405_v22, %v1523_v2  ;;  %v1550_v36 = vadd.f32 %v1943_v26, %v1544_v24 }
0x12a6   :  { %v1545_v27 = vmul.f32 %v1942_v18, %v1539_v23 }
0x12a8   :  { %v1551_v39 = vadd.f32 %v1943_v26, %v1545_v27 }
0x12aa   :  { %v1552_v29 = vpack.c.bf16 %v1551_v39, %v1550_v36 }
0x12ac   :  { %2234 = vmatmul.mubr.msk.bf16.vlgmr.msra.gmra.mxu0 %vm67_vm0, %v1552_v29  ;;  %v1966_v29 = vld [vmem:[#allocation7 + $0x11] ss:$0 sm:$0xff] }
0x12ad   :  { %2253 = vmatprep.mubr.msk.bf16.mxu0 %vm2508_vm1, %v2507_v15 }
0x136c   :  { %v1611_v38 = vpop.f32.mrf.mxu0 }
0x136d   :  { %v1612_v40 = vadd.f32 %v1948_v37, %v1611_v38 }
0x136e   :  { %v2235_v31 = vpop.f32.mrf.mxu0 }
0x136f   :  { %v1618_v41 = vmul.f32 %v1612_v40, %v1612_v40 }
0x1370   :  { %v1614_v42 = vpop.f32.mrf.mxu0 }
0x1371   :  { %v1620_v44 = vmul.f32 %v1618_v41, %v1612_v40  ;;  %v1615_v45 = vadd.f32 %v1948_v37, %v1614_v42 }
0x1372   :  { %v2236_v46 = vpop.f32.mrf.mxu0 }
0x1373   :  { %v1622_v47 = vmul.f32 0.044715, %v1620_v44  ;;  %v1619_v48 = vmul.f32 %v1615_v45, %v1615_v45 }
0x1375   :  { %v1624_v49 = vadd.f32 %v1622_v47, %v1612_v40  ;;  %v1621_v50 = vmul.f32 %v1619_v48, %v1615_v45 }
0x1377   :  { %v1626_v51 = vmul.f32 0.7978846, %v1624_v49  ;;  %v1623_v52 = vmul.f32 0.044715, %v1621_v50 }
0x1379   :  { %2406 = vtanh.f32 %v1626_v51  ;;  %v1625_v53 = vadd.f32 %v1623_v52, %v1615_v45 }
0x137b   :  { %v1627_v54 = vmul.f32 0.7978846, %v1625_v53 }
0x137d   :  { %2408 = vtanh.f32 %v1627_v54 }
0x1386   :  { %v2407_v56 = vpop.eup %2406 }
0x1387   :  { %v1630_v58 = vadd.f32 1.0, %v2407_v56 }
0x1389   :  { %v1632_v61 = vmul.f32 0.5, %v1630_v58 }
0x138a   :  { %v2409_v59 = vpop.eup %2408 }
0x138b   :  { %v1631_v25 = vadd.f32 1.0, %v2409_v59  ;;  %v1634_v57 = vmul.f32 %v1632_v61, %v1612_v40  ;;  %v1968_v59 = vld [vmem:[#allocation7 + $0x2] ss:$0 sm:$0xff] }
0x138d   :  { %v1633_v55 = vmul.f32 0.5, %v1631_v25 }
0x138f   :  { %v1635_v62 = vmul.f32 %v1633_v55, %v1615_v45 }
0x1391   :  { %v1636_v63 = vpack.c.bf16 %v1635_v62, %v1634_v57 }
0x1393   :  { %2246 = vmatmul.mubr.msk.bf16.vlgmr.msra.gmra.mxu1 %vm349_vm3, %v1636_v63 }
0x1453   :  { %v1712_v3 = vpop.f32.mrf.mxu1 }
0x1454   :  { %v1713_v1 = vadd.f32 %v1960_v0, %v1712_v3 }
0x1455   :  { %v2247_v60 = vpop.f32.mrf.mxu1 }
0x1456   :  { %v1719_v4 = vadd.f32 %v1713_v1, %v1550_v36 }
0x1457   :  { %v1715_v28 = vpop.f32.mrf.mxu1 }
0x1458   :  { %v1716_v10 = vadd.f32 %v1960_v0, %v1715_v28  ;;  %v1723_v11 = vsel %vm67_vm0, %v1719_v4, 0.0 }
0x1459   :  { %1724 = vadd.xlane.f32.xlu0 %v1723_v11  ;;  %v2248_v2 = vpop.f32.mrf.mxu1 }
0x145a   :  { %v1720_v20 = vadd.f32 %v1716_v10, %v1551_v39 }
0x145c   :  { %v1726_v5 = vsel %vm67_vm0, %v1720_v20, 0.0 }
0x145d   :  { %1727 = vadd.xlane.f32.xlu1 %v1726_v5 }
0x14e2   :  { %v1725_v6 = vpop.xlane.xlu0 %1724 }
0x14e3   :  { %v1729_v21 = vmul.f32 0.03125, %v1725_v6 }
0x14e5   :  { %v1731_v7 = vsub.f32 %v1719_v4, %v1729_v21 }
0x14e6   :  { %v1728_v8 = vpop.xlane.xlu1 %1727 }
0x14e7   :  { %v1730_v9 = vmul.f32 0.03125, %v1728_v8  ;;  %v1733_v12 = vmul.f32 %v1731_v7, %v1731_v7 }
0x14e9   :  { %v1732_v19 = vsub.f32 %v1720_v20, %v1730_v9  ;;  %v1735_v13 = vsel %vm67_vm0, %v1733_v12, 0.0 }
0x14ea   :  { %1736 = vadd.xlane.f32.xlu0 %v1735_v13 }
0x14eb   :  { %v1734_v14 = vmul.f32 %v1732_v19, %v1732_v19 }
0x14ed   :  { %v1738_v16 = vsel %vm67_vm0, %v1734_v14, 0.0 }
0x14ee   :  { %1739 = vadd.xlane.f32.xlu1 %v1738_v16 }
0x14ff   :  { %1786 = vrot.lane.b32.xlu1 %v2777_v43, %s2513_s15 }
0x1500   :  { %1788 = vrot.lane.b32.xlu0 %v2771_v32, %s2513_s15  ;;  %s1844_s15 = sshll.u32 %s2516_s3, 4  ;;  %s1845_s15 = int_to_ptr.vmem [resolvable:$true] %s1844_s15 }
0x1501   :  { %s2476_s27 = scalar_lea.vmem %s1845_s15, 32  ;;  %p2481_p2 = scmp.lt.s32.totalorder %s1845_s15, %s1845_s15 }
0x1502   :  { %p2477_p1 = scmp.ne.s32.totalorder %s1845_s15, %s2476_s27  ;;  %p2482_p3 = scmp.lt.s32.totalorder %s2476_s27, %s2476_s27 }
0x1504   :  { %p2483_p4 = por %p2482_p3, %p2481_p2 }
0x1506   :  { %p2484_p5 = pnand %p2483_p4, %p2477_p1 }
0x1573   :  { %v1737_v17 = vpop.xlane.xlu0 %1736 }
0x1574   :  { %v1741_v18 = vmul.f32 0.03125, %v1737_v17 }
0x1576   :  { %v1743_v22 = vadd.f32 1e-12, %v1741_v18 }
0x1577   :  { %v1740_v23 = vpop.xlane.xlu1 %1739  ;;  %v1789_v24 = vpop.permute.xlu0 %1788 }
0x1578   :  { %2410 = vrsqrt.f32 %v1743_v22  ;;  %v1742_v26 = vmul.f32 0.03125, %v1740_v23  ;;  %2250 = vmatpush3.bf16.msra.mxu0 %v1789_v24 }
0x1579   :  { %2251 = vmatprep.subr.bf16.mxu0 %v2507_v15 }
0x157a   :  { %v1744_v27 = vadd.f32 1e-12, %v1742_v26 }
0x157b   :  { %v1787_v36 = vpop.permute.xlu1 %1786 }
0x157c   :  { %2412 = vrsqrt.f32 %v1744_v27  ;;  %2252 = vmatpush3.bf16.msra.mxu0 %v1787_v36 }
0x1585   :  { %v2411_v39 = vpop.eup %2410 }
0x1586   :  { %v1747_v43 = vmul.f32 %v2411_v39, %v1731_v7 }
0x1588   :  { %v1753_v33 = vmul.f32 %v1966_v29, %v1747_v43 }
0x1589   :  { %v2413_v32 = vpop.eup %2412 }
0x158a   :  { %v1759_v34 = vadd.f32 %v1967_v30, %v1753_v33  ;;  %v1748_v35 = vmul.f32 %v2413_v32, %v1732_v19 }
0x158c   :  { %v1761_v37 = vsel %vm67_vm0, %v1759_v34, 0.0  ;;  %v1754_v38 = vmul.f32 %v1966_v29, %v1748_v35 }
0x158d   :  { %v1762_v40 = vrot.slane %v1761_v37, 4 }
0x158e   :  { %v1760_v31 = vadd.f32 %v1967_v30, %v1754_v38 }
0x158f   :  { %v1763_v41 = vadd.f32 %v1762_v40, %v1761_v37 }
0x1590   :  { %v1770_v15 = vsel %vm67_vm0, %v1760_v31, 0.0 }
0x1591   :  { %v1771_v42 = vrot.slane %v1770_v15, 4  ;;  %v1764_v44 = vrot.slane %v1763_v41, 2 }
0x1593   :  { %v1765_v45 = vadd.f32 %v1764_v44, %v1763_v41  ;;  %v1772_v46 = vadd.f32 %v1771_v42, %v1770_v15 }
0x1595   :  { %v1766_v47 = vrot.slane %v1765_v45, 1  ;;  %v1773_v48 = vrot.slane %v1772_v46, 2 }
0x1597   :  { %v1774_v49 = vadd.f32 %v1773_v48, %v1772_v46  ;;  %v1767_v50 = vadd.f32 %v1766_v47, %v1765_v45 }
0x1599   :  { %v1775_v51 = vrot.slane %v1774_v49, 1  ;;  %v1769_v53 = vmul.f32 0.125, %v1767_v50 }
0x159b   :  { %v1776_v52 = vadd.f32 %v1775_v51, %v1774_v49 }
0x159d   :  { %v1777_v54 = vmul.f32 0.125, %v1776_v52 }
0x159f   :  { %v1779_v56 = vsel %vm1778_vm6, %v1769_v53, %v1777_v54 }
0x15a0   :  { %v1780_v58 = vpack.c.bf16 %v1779_v56, %v1779_v56 }
0x15a2   :  { %2254 = vmatmul.mubr.msk.bf16.vlgmr.msra.gmra.mxu0 %vm67_vm0, %v1780_v58 }
0x1662   :  { %v1829_v61 = vpop.f32.mrf.mxu0 }
0x1663   :  { %v1830_v25 = vadd.f32 %v1968_v59, %v1829_v61 }
0x1664   :  { %v2255_v55 = vpop.f32.mrf.mxu0 }
0x1665   :  { %2414 = vtanh.f32 %v1830_v25 }
0x1666   :  { %v1832_v57 = vpop.f32.mrf.mxu0 }
0x1668   :  { %v2256_v62 = vpop.f32.mrf.mxu0 }
0x1672   :  { %v2415_v63 = vpop.eup %2414 }
0x1673   :  { %1837 = vst.msk [vmem:[#allocation8] sm:$0x3] %vm1836_vm7, %v2415_v63 }
0x1674   :  { %2487 = shalt.err (!%p2484_p5)
}
0x1675   :  { %1847 = dma.vmem_to_hbm [thread:$0]  %s1845_s15, 32, %s3050_s5, [#allocation4]  }
0x1676   :  { %2500 = dma.done.wait [#allocation4], 32  }
0x1677   :  { %2501 = vsyncadd [#allocation4], 4294967264 }
0x1678   :  { %1851 = vsyncpa [#allocation3], 1 }
0x1679   :  { %1852 = vsyncpa [#allocation6], 1 }
0x167a   :  { %1853 = vsyncpa [#allocation4], 1 }

</bundles_post_ra>
